<compile_context>
chip_gen: v6e
topology: v6e:2x2x1
jax: 0.10.0
libtpu: 0.0.40
codegen_flags: <defaults>
</compile_context>

<pallas_src>
import functools
import math

import jax
import jax.numpy as jnp
from jax import lax
from jax.experimental import pallas as pl
from jax.experimental.pallas import tpu as pltpu


def _self_attention_kernel(x_ref, wq_ref, wk_ref, wv_ref, o_ref, *,
                           scale, matmul_dtype):
    """One grid step processes a group of G independent (S, d_in) examples.

    x_ref : (G, S, d_in)      activations for this group
    w*_ref: (d_in, d_kq|d_v)  shared projection weights (resident across grid)
    o_ref : (S, G * d_v)      lane-dense packed output
                              (example i of the group -> cols [i*d_v, (i+1)*d_v))
    """
    G, S, d_in = x_ref.shape
    d_v = wv_ref.shape[1]
    mm_dt = matmul_dtype if matmul_dtype is not None else x_ref.dtype

    # --- projections: all G*S rows at once (bigger MXU tiles, shared weights) ---
    x2 = x_ref[...].reshape(G * S, d_in).astype(mm_dt)
    wq = wq_ref[...].astype(mm_dt)
    wk = wk_ref[...].astype(mm_dt)
    wv = wv_ref[...].astype(mm_dt)

    q = jnp.dot(x2, wq, preferred_element_type=jnp.float32)          # (G*S, d_kq)
    k = jnp.dot(x2, wk, preferred_element_type=jnp.float32)          # (G*S, d_kq)
    v = jnp.dot(x2, wv, preferred_element_type=jnp.float32)          # (G*S, d_v)

    # Fold the 1/sqrt(d_kq) scale into Q (scales S*d_kq elems, not S*S).
    q = q * scale

    q = q.reshape(G, S, -1)
    k = k.reshape(G, S, -1)
    v = v.reshape(G, S, -1)

    # --- scores: per-example Q @ K^T, contracting last dims (no K transpose) ---
    scores = lax.dot_general(
        q, k,
        dimension_numbers=(((2,), (2,)), ((0,), (0,))),
        preferred_element_type=jnp.float32)                          # (G, S, S)

    # --- numerically stable softmax, kept in f32 (v5e-safe) ---
    m = jnp.max(scores, axis=-1, keepdims=True)
    e = jnp.exp(scores - m)
    denom = jnp.sum(e, axis=-1, keepdims=True)                       # (G, S, 1)

    # --- context: P @ V first, then normalize d_v-wide with an EUP reciprocal ---
    ctx = lax.dot_general(
        e.astype(mm_dt), v.astype(mm_dt),
        dimension_numbers=(((2,), (1,)), ((0,), (0,))),
        preferred_element_type=jnp.float32)                          # (G, S, d_v)
    ctx = ctx * pl.reciprocal(denom)   # exact; approx=True if tolerance allows

    # --- lane-dense store: pack the G examples along lanes -> (S, G*d_v) slab ---
    out = jnp.concatenate([ctx[i] for i in range(G)], axis=-1)       # (S, G*d_v)
    o_ref[...] = out.astype(o_ref.dtype)


def _choose_group_size(batch, seq, d_in, d_kq, d_v):
    """Pick examples-per-grid-step G so G*d_v is a multiple of 128 (lane-dense
    output) and the per-step f32 intermediates stay within a modest VMEM budget."""
    g_unit = 128 // math.gcd(d_v, 128)            # smallest lane-dense group
    # Dominant per-example f32 intermediates: scores/probs (S*S), q/k/v, x, ctx, out.
    per_example_bytes = 4 * seq * (seq + d_in + 2 * d_kq + 3 * d_v)
    vmem_cap = max(1, (6 * 1024 * 1024) // max(1, per_example_bytes))
    lane_cap = max(1, 512 // max(1, d_v))         # keep packed output slab <= 512 lanes
    m_cap = max(1, min(vmem_cap, lane_cap) // g_unit)
    m_needed = max(1, pl.cdiv(batch, g_unit))
    return g_unit * min(m_needed, m_cap)


def self_attention(x, w_query, w_key, w_value, *, matmul_dtype=None):
    """Pallas-backed SelfAttention.forward.

    x:        (seq, d_in) or (batch, seq, d_in)  float32
    w_query:  (d_in, d_out_kq)
    w_key:    (d_in, d_out_kq)
    w_value:  (d_in, d_out_v)
    returns:  (seq, d_out_v) or (batch, seq, d_out_v) float32

    matmul_dtype: set to jnp.bfloat16 on v6e/v7x for full-rate MXU if the
    accuracy budget allows (f32 accumulation either way).
    """
    squeeze = (x.ndim == 2)
    if squeeze:
        x = x[None]
    B, S, d_in = x.shape
    d_kq = w_query.shape[1]
    d_v = w_value.shape[1]

    G = _choose_group_size(B, S, d_in, d_kq, d_v)
    num_groups = pl.cdiv(B, G)
    B_pad = num_groups * G
    if B_pad != B:
        # Zero padding is safe: zero scores -> uniform softmax -> zero context.
        x = jnp.concatenate(
            [x, jnp.zeros((B_pad - B, S, d_in), x.dtype)], axis=0)

    kernel = functools.partial(
        _self_attention_kernel,
        scale=1.0 / math.sqrt(d_kq),
        matmul_dtype=matmul_dtype)

    out_packed = pl.pallas_call(
        kernel,
        out_shape=jax.ShapeDtypeStruct((S, B_pad * d_v), jnp.float32),
        grid=(num_groups,),
        in_specs=[
            # activations: one group of G examples per grid step
            pl.BlockSpec((G, S, d_in), lambda g: (g, 0, 0)),
            # shared weights: constant index_map -> DMA'd once, stay resident
            pl.BlockSpec((d_in, d_kq), lambda g: (0, 0)),
            pl.BlockSpec((d_in, d_kq), lambda g: (0, 0)),
            pl.BlockSpec((d_in, d_v), lambda g: (0, 0)),
        ],
        # lane-dense packed output: one (S, G*d_v) slab per step
        out_specs=pl.BlockSpec((S, G * d_v), lambda g: (0, g)),
        compiler_params=pltpu.CompilerParams(
            # groups are independent -> shard across TensorCores on v7x
            dimension_semantics=("parallel",)),
    )(x, w_query, w_key, w_value)

    # Unpack (S, B_pad*d_v) -> (B, S, d_v). Pure layout plumbing.
    out = out_packed.reshape(S, B_pad, d_v).transpose(1, 0, 2)[:B]
    return out[0] if squeeze else out


def self_attention_ref(x, w_query, w_key, w_value):
    """Pure-JAX reference matching the PyTorch forward exactly (2-D x)."""
    keys = x @ w_key
    queries = x @ w_query
    values = x @ w_value
    attn_scores = queries @ keys.T
    attn_weights = jax.nn.softmax(attn_scores / (w_query.shape[1] ** 0.5), axis=-1)
    return attn_weights @ values


if __name__ == "__main__":
    # Module-consistent small shapes: seq=8, d_in=32, d_kq=16, d_v=16.
    # batch=48 exercises a multi-step grid (G=32 -> 2 steps) plus zero padding.
    seq, d_in, d_out_kq, d_out_v = 8, 32, 16, 16
    batch = 48

    key = jax.random.PRNGKey(0)
    kx, kq, kk, kv = jax.random.split(key, 4)

    xb = jax.random.normal(kx, (batch, seq, d_in), dtype=jnp.float32)
    # torch.rand -> uniform [0, 1)
    w_query = jax.random.uniform(kq, (d_in, d_out_kq), dtype=jnp.float32)
    w_key = jax.random.uniform(kk, (d_in, d_out_kq), dtype=jnp.float32)
    w_value = jax.random.uniform(kv, (d_in, d_out_v), dtype=jnp.float32)

    # Batched path (grid over example groups, packed lane-dense output).
    out_b = jax.block_until_ready(self_attention(xb, w_query, w_key, w_value))
    ref_b = jax.vmap(self_attention_ref, in_axes=(0, None, None, None))(
        xb, w_query, w_key, w_value)
    assert out_b.shape == (batch, seq, d_out_v)
    assert jnp.allclose(out_b, ref_b, atol=1e-4, rtol=1e-4), "batched mismatch"

    # Original 2-D module semantics.
    out_1 = jax.block_until_ready(self_attention(xb[0], w_query, w_key, w_value))
    ref_1 = self_attention_ref(xb[0], w_query, w_key, w_value)
    assert out_1.shape == (seq, d_out_v)
    assert jnp.allclose(out_1, ref_1, atol=1e-4, rtol=1e-4), "2-D mismatch"

    print("KERNEL_OK")
</pallas_src>

<mosaic_0001>
module attributes {stable_mosaic.version = 11 : i64} {
  func.func @_self_attention_kernel(%arg0: i32, %arg1: memref<32x8x32xf32, #tpu.memory_space<vmem>>, %arg2: memref<32x16xf32, #tpu.memory_space<vmem>>, %arg3: memref<32x16xf32, #tpu.memory_space<vmem>>, %arg4: memref<32x16xf32, #tpu.memory_space<vmem>>, %arg5: memref<8x512xf32, #tpu.memory_space<vmem>>) attributes {dimension_semantics = [#tpu.dimension_semantics<parallel>], iteration_bounds = array<i64: 2>, scalar_prefetch = 0 : i64, scratch_operands = 0 : i64, tpu.core_type = #tpu.core_type<tc>, window_params = [{transform_indices = @transform_0, window_bounds = array<i64: 32, 8, 32>}, {pipeline_mode = #tpu.pipeline_mode<synchronous>, transform_indices = @transform_1, window_bounds = array<i64: 32, 16>}, {pipeline_mode = #tpu.pipeline_mode<synchronous>, transform_indices = @transform_2, window_bounds = array<i64: 32, 16>}, {pipeline_mode = #tpu.pipeline_mode<synchronous>, transform_indices = @transform_3, window_bounds = array<i64: 32, 16>}, {transform_indices = @transform_4, window_bounds = array<i64: 8, 512>}]} {
    %c0 = arith.constant 0 : index
    %c0_0 = arith.constant 0 : index
    %c0_1 = arith.constant 0 : index
    %0 = vector.load %arg1[%c0, %c0_0, %c0_1] : memref<32x8x32xf32, #tpu.memory_space<vmem>>, vector<32x8x32xf32>
    %1 = vector.shape_cast %0 : vector<32x8x32xf32> to vector<256x32xf32>
    %c0_2 = arith.constant 0 : index
    %c0_3 = arith.constant 0 : index
    %2 = vector.load %arg2[%c0_2, %c0_3] : memref<32x16xf32, #tpu.memory_space<vmem>>, vector<32x16xf32>
    %c0_4 = arith.constant 0 : index
    %c0_5 = arith.constant 0 : index
    %3 = vector.load %arg3[%c0_4, %c0_5] : memref<32x16xf32, #tpu.memory_space<vmem>>, vector<32x16xf32>
    %c0_6 = arith.constant 0 : index
    %c0_7 = arith.constant 0 : index
    %4 = vector.load %arg4[%c0_6, %c0_7] : memref<32x16xf32, #tpu.memory_space<vmem>>, vector<32x16xf32>
    %cst = arith.constant dense<0.000000e+00> : vector<256x16xf32>
    %5 = tpu.matmul %1, %2, %cst {dimension_numbers = #tpu.dot_dimension_numbers<[1], [0], [0], [1], [0, 0, 1, 1], [], []>} : vector<256x32xf32>, vector<32x16xf32>, vector<256x16xf32> -> vector<256x16xf32>
    %cst_8 = arith.constant dense<0.000000e+00> : vector<256x16xf32>
    %6 = tpu.matmul %1, %3, %cst_8 {dimension_numbers = #tpu.dot_dimension_numbers<[1], [0], [0], [1], [0, 0, 1, 1], [], []>} : vector<256x32xf32>, vector<32x16xf32>, vector<256x16xf32> -> vector<256x16xf32>
    %cst_9 = arith.constant dense<0.000000e+00> : vector<256x16xf32>
    %7 = tpu.matmul %1, %4, %cst_9 {dimension_numbers = #tpu.dot_dimension_numbers<[1], [0], [0], [1], [0, 0, 1, 1], [], []>} : vector<256x32xf32>, vector<32x16xf32>, vector<256x16xf32> -> vector<256x16xf32>
    %cst_10 = arith.constant 2.500000e-01 : f32
    %8 = vector.broadcast %cst_10 : f32 to vector<256x16xf32>
    %9 = arith.mulf %5, %8 : vector<256x16xf32>
    %10 = vector.shape_cast %9 : vector<256x16xf32> to vector<32x8x16xf32>
    %11 = vector.shape_cast %6 : vector<256x16xf32> to vector<32x8x16xf32>
    %12 = vector.shape_cast %7 : vector<256x16xf32> to vector<32x8x16xf32>
    %cst_11 = arith.constant dense<0.000000e+00> : vector<32x8x8xf32>
    %13 = tpu.matmul %10, %11, %cst_11 {dimension_numbers = #tpu.dot_dimension_numbers<[2], [2], [1], [1], [0, 0, 0, 1, 1, 1], [0], [0]>} : vector<32x8x16xf32>, vector<32x8x16xf32>, vector<32x8x8xf32> -> vector<32x8x8xf32>
    %cst_12 = arith.constant dense<0xFF800000> : vector<32x8xf32>
    %14 = vector.multi_reduction <maximumf>, %13, %cst_12 [2] : vector<32x8x8xf32> to vector<32x8xf32>
    %15 = vector.shape_cast %14 : vector<32x8xf32> to vector<32x8x1xf32>
    %16 = vector.broadcast %15 : vector<32x8x1xf32> to vector<32x8x8xf32>
    %17 = arith.subf %13, %16 : vector<32x8x8xf32>
    %18 = math.exp %17 : vector<32x8x8xf32>
    %cst_13 = arith.constant dense<0.000000e+00> : vector<32x8xf32>
    %19 = vector.multi_reduction <add>, %18, %cst_13 [2] : vector<32x8x8xf32> to vector<32x8xf32>
    %20 = vector.shape_cast %19 : vector<32x8xf32> to vector<32x8x1xf32>
    %cst_14 = arith.constant dense<0.000000e+00> : vector<32x8x16xf32>
    %21 = tpu.matmul %18, %12, %cst_14 {dimension_numbers = #tpu.dot_dimension_numbers<[2], [1], [1], [2], [0, 0, 0, 1, 1, 2], [0], [0]>} : vector<32x8x8xf32>, vector<32x8x16xf32>, vector<32x8x16xf32> -> vector<32x8x16xf32>
    %22 = tpu.reciprocal %20 : vector<32x8x1xf32> -> vector<32x8x1xf32>
    %23 = vector.broadcast %22 : vector<32x8x1xf32> to vector<32x8x16xf32>
    %24 = arith.mulf %21, %23 : vector<32x8x16xf32>
    %25 = vector.extract_strided_slice %24 {offsets = [0, 0, 0], sizes = [1, 8, 16], strides = [1, 1, 1]} : vector<32x8x16xf32> to vector<1x8x16xf32>
    %26 = vector.shape_cast %25 : vector<1x8x16xf32> to vector<8x16xf32>
    %27 = vector.extract_strided_slice %24 {offsets = [1, 0, 0], sizes = [1, 8, 16], strides = [1, 1, 1]} : vector<32x8x16xf32> to vector<1x8x16xf32>
    %28 = vector.shape_cast %27 : vector<1x8x16xf32> to vector<8x16xf32>
    %29 = vector.extract_strided_slice %24 {offsets = [2, 0, 0], sizes = [1, 8, 16], strides = [1, 1, 1]} : vector<32x8x16xf32> to vector<1x8x16xf32>
    %30 = vector.shape_cast %29 : vector<1x8x16xf32> to vector<8x16xf32>
    %31 = vector.extract_strided_slice %24 {offsets = [3, 0, 0], sizes = [1, 8, 16], strides = [1, 1, 1]} : vector<32x8x16xf32> to vector<1x8x16xf32>
    %32 = vector.shape_cast %31 : vector<1x8x16xf32> to vector<8x16xf32>
    %33 = vector.extract_strided_slice %24 {offsets = [4, 0, 0], sizes = [1, 8, 16], strides = [1, 1, 1]} : vector<32x8x16xf32> to vector<1x8x16xf32>
    %34 = vector.shape_cast %33 : vector<1x8x16xf32> to vector<8x16xf32>
    %35 = vector.extract_strided_slice %24 {offsets = [5, 0, 0], sizes = [1, 8, 16], strides = [1, 1, 1]} : vector<32x8x16xf32> to vector<1x8x16xf32>
    %36 = vector.shape_cast %35 : vector<1x8x16xf32> to vector<8x16xf32>
    %37 = vector.extract_strided_slice %24 {offsets = [6, 0, 0], sizes = [1, 8, 16], strides = [1, 1, 1]} : vector<32x8x16xf32> to vector<1x8x16xf32>
    %38 = vector.shape_cast %37 : vector<1x8x16xf32> to vector<8x16xf32>
    %39 = vector.extract_strided_slice %24 {offsets = [7, 0, 0], sizes = [1, 8, 16], strides = [1, 1, 1]} : vector<32x8x16xf32> to vector<1x8x16xf32>
    %40 = vector.shape_cast %39 : vector<1x8x16xf32> to vector<8x16xf32>
    %41 = vector.extract_strided_slice %24 {offsets = [8, 0, 0], sizes = [1, 8, 16], strides = [1, 1, 1]} : vector<32x8x16xf32> to vector<1x8x16xf32>
    %42 = vector.shape_cast %41 : vector<1x8x16xf32> to vector<8x16xf32>
    %43 = vector.extract_strided_slice %24 {offsets = [9, 0, 0], sizes = [1, 8, 16], strides = [1, 1, 1]} : vector<32x8x16xf32> to vector<1x8x16xf32>
    %44 = vector.shape_cast %43 : vector<1x8x16xf32> to vector<8x16xf32>
    %45 = vector.extract_strided_slice %24 {offsets = [10, 0, 0], sizes = [1, 8, 16], strides = [1, 1, 1]} : vector<32x8x16xf32> to vector<1x8x16xf32>
    %46 = vector.shape_cast %45 : vector<1x8x16xf32> to vector<8x16xf32>
    %47 = vector.extract_strided_slice %24 {offsets = [11, 0, 0], sizes = [1, 8, 16], strides = [1, 1, 1]} : vector<32x8x16xf32> to vector<1x8x16xf32>
    %48 = vector.shape_cast %47 : vector<1x8x16xf32> to vector<8x16xf32>
    %49 = vector.extract_strided_slice %24 {offsets = [12, 0, 0], sizes = [1, 8, 16], strides = [1, 1, 1]} : vector<32x8x16xf32> to vector<1x8x16xf32>
    %50 = vector.shape_cast %49 : vector<1x8x16xf32> to vector<8x16xf32>
    %51 = vector.extract_strided_slice %24 {offsets = [13, 0, 0], sizes = [1, 8, 16], strides = [1, 1, 1]} : vector<32x8x16xf32> to vector<1x8x16xf32>
    %52 = vector.shape_cast %51 : vector<1x8x16xf32> to vector<8x16xf32>
    %53 = vector.extract_strided_slice %24 {offsets = [14, 0, 0], sizes = [1, 8, 16], strides = [1, 1, 1]} : vector<32x8x16xf32> to vector<1x8x16xf32>
    %54 = vector.shape_cast %53 : vector<1x8x16xf32> to vector<8x16xf32>
    %55 = vector.extract_strided_slice %24 {offsets = [15, 0, 0], sizes = [1, 8, 16], strides = [1, 1, 1]} : vector<32x8x16xf32> to vector<1x8x16xf32>
    %56 = vector.shape_cast %55 : vector<1x8x16xf32> to vector<8x16xf32>
    %57 = vector.extract_strided_slice %24 {offsets = [16, 0, 0], sizes = [1, 8, 16], strides = [1, 1, 1]} : vector<32x8x16xf32> to vector<1x8x16xf32>
    %58 = vector.shape_cast %57 : vector<1x8x16xf32> to vector<8x16xf32>
    %59 = vector.extract_strided_slice %24 {offsets = [17, 0, 0], sizes = [1, 8, 16], strides = [1, 1, 1]} : vector<32x8x16xf32> to vector<1x8x16xf32>
    %60 = vector.shape_cast %59 : vector<1x8x16xf32> to vector<8x16xf32>
    %61 = vector.extract_strided_slice %24 {offsets = [18, 0, 0], sizes = [1, 8, 16], strides = [1, 1, 1]} : vector<32x8x16xf32> to vector<1x8x16xf32>
    %62 = vector.shape_cast %61 : vector<1x8x16xf32> to vector<8x16xf32>
    %63 = vector.extract_strided_slice %24 {offsets = [19, 0, 0], sizes = [1, 8, 16], strides = [1, 1, 1]} : vector<32x8x16xf32> to vector<1x8x16xf32>
    %64 = vector.shape_cast %63 : vector<1x8x16xf32> to vector<8x16xf32>
    %65 = vector.extract_strided_slice %24 {offsets = [20, 0, 0], sizes = [1, 8, 16], strides = [1, 1, 1]} : vector<32x8x16xf32> to vector<1x8x16xf32>
    %66 = vector.shape_cast %65 : vector<1x8x16xf32> to vector<8x16xf32>
    %67 = vector.extract_strided_slice %24 {offsets = [21, 0, 0], sizes = [1, 8, 16], strides = [1, 1, 1]} : vector<32x8x16xf32> to vector<1x8x16xf32>
    %68 = vector.shape_cast %67 : vector<1x8x16xf32> to vector<8x16xf32>
    %69 = vector.extract_strided_slice %24 {offsets = [22, 0, 0], sizes = [1, 8, 16], strides = [1, 1, 1]} : vector<32x8x16xf32> to vector<1x8x16xf32>
    %70 = vector.shape_cast %69 : vector<1x8x16xf32> to vector<8x16xf32>
    %71 = vector.extract_strided_slice %24 {offsets = [23, 0, 0], sizes = [1, 8, 16], strides = [1, 1, 1]} : vector<32x8x16xf32> to vector<1x8x16xf32>
    %72 = vector.shape_cast %71 : vector<1x8x16xf32> to vector<8x16xf32>
    %73 = vector.extract_strided_slice %24 {offsets = [24, 0, 0], sizes = [1, 8, 16], strides = [1, 1, 1]} : vector<32x8x16xf32> to vector<1x8x16xf32>
    %74 = vector.shape_cast %73 : vector<1x8x16xf32> to vector<8x16xf32>
    %75 = vector.extract_strided_slice %24 {offsets = [25, 0, 0], sizes = [1, 8, 16], strides = [1, 1, 1]} : vector<32x8x16xf32> to vector<1x8x16xf32>
    %76 = vector.shape_cast %75 : vector<1x8x16xf32> to vector<8x16xf32>
    %77 = vector.extract_strided_slice %24 {offsets = [26, 0, 0], sizes = [1, 8, 16], strides = [1, 1, 1]} : vector<32x8x16xf32> to vector<1x8x16xf32>
    %78 = vector.shape_cast %77 : vector<1x8x16xf32> to vector<8x16xf32>
    %79 = vector.extract_strided_slice %24 {offsets = [27, 0, 0], sizes = [1, 8, 16], strides = [1, 1, 1]} : vector<32x8x16xf32> to vector<1x8x16xf32>
    %80 = vector.shape_cast %79 : vector<1x8x16xf32> to vector<8x16xf32>
    %81 = vector.extract_strided_slice %24 {offsets = [28, 0, 0], sizes = [1, 8, 16], strides = [1, 1, 1]} : vector<32x8x16xf32> to vector<1x8x16xf32>
    %82 = vector.shape_cast %81 : vector<1x8x16xf32> to vector<8x16xf32>
    %83 = vector.extract_strided_slice %24 {offsets = [29, 0, 0], sizes = [1, 8, 16], strides = [1, 1, 1]} : vector<32x8x16xf32> to vector<1x8x16xf32>
    %84 = vector.shape_cast %83 : vector<1x8x16xf32> to vector<8x16xf32>
    %85 = vector.extract_strided_slice %24 {offsets = [30, 0, 0], sizes = [1, 8, 16], strides = [1, 1, 1]} : vector<32x8x16xf32> to vector<1x8x16xf32>
    %86 = vector.shape_cast %85 : vector<1x8x16xf32> to vector<8x16xf32>
    %87 = vector.extract_strided_slice %24 {offsets = [31, 0, 0], sizes = [1, 8, 16], strides = [1, 1, 1]} : vector<32x8x16xf32> to vector<1x8x16xf32>
    %88 = vector.shape_cast %87 : vector<1x8x16xf32> to vector<8x16xf32>
    %89 = tpu.concatenate %26, %28, %30, %32, %34, %36, %38, %40, %42, %44, %46, %48, %50, %52, %54, %56 in 1 : vector<8x16xf32>, vector<8x16xf32>, vector<8x16xf32>, vector<8x16xf32>, vector<8x16xf32>, vector<8x16xf32>, vector<8x16xf32>, vector<8x16xf32>, vector<8x16xf32>, vector<8x16xf32>, vector<8x16xf32>, vector<8x16xf32>, vector<8x16xf32>, vector<8x16xf32>, vector<8x16xf32>, vector<8x16xf32> -> vector<8x256xf32>
    %90 = tpu.concatenate %58, %60, %62, %64, %66, %68, %70, %72, %74, %76, %78, %80, %82, %84, %86, %88 in 1 : vector<8x16xf32>, vector<8x16xf32>, vector<8x16xf32>, vector<8x16xf32>, vector<8x16xf32>, vector<8x16xf32>, vector<8x16xf32>, vector<8x16xf32>, vector<8x16xf32>, vector<8x16xf32>, vector<8x16xf32>, vector<8x16xf32>, vector<8x16xf32>, vector<8x16xf32>, vector<8x16xf32>, vector<8x16xf32> -> vector<8x256xf32>
    %91 = tpu.concatenate %89, %90 in 1 : vector<8x256xf32>, vector<8x256xf32> -> vector<8x512xf32>
    %c0_15 = arith.constant 0 : index
    %c0_16 = arith.constant 0 : index
    %92 = vector.load %arg5[%c0_15, %c0_16] : memref<8x512xf32, #tpu.memory_space<vmem>>, vector<8x512xf32>
    tpu.vector_store %arg5[%c0_15, %c0_16], %91 {strides = array<i32>} : memref<8x512xf32, #tpu.memory_space<vmem>>, vector<8x512xf32>,
    return
  }
  func.func @transform_0(%arg0: i32) -> (i32, i32, i32) {
    %c0_i32 = arith.constant 0 : i32
    %c0_i32_0 = arith.constant 0 : i32
    %c0_i32_1 = arith.constant 0 : i32
    return %arg0, %c0_i32, %c0_i32_0 : i32, i32, i32
  }
  func.func @transform_1(%arg0: i32) -> (i32, i32) {
    %c0_i32 = arith.constant 0 : i32
    %c0_i32_0 = arith.constant 0 : i32
    %c0_i32_1 = arith.constant 0 : i32
    return %c0_i32, %c0_i32_0 : i32, i32
  }
  func.func @transform_2(%arg0: i32) -> (i32, i32) {
    %c0_i32 = arith.constant 0 : i32
    %c0_i32_0 = arith.constant 0 : i32
    %c0_i32_1 = arith.constant 0 : i32
    return %c0_i32, %c0_i32_0 : i32, i32
  }
  func.func @transform_3(%arg0: i32) -> (i32, i32) {
    %c0_i32 = arith.constant 0 : i32
    %c0_i32_0 = arith.constant 0 : i32
    %c0_i32_1 = arith.constant 0 : i32
    return %c0_i32, %c0_i32_0 : i32, i32
  }
  func.func @transform_4(%arg0: i32) -> (i32, i32) {
    %c0_i32 = arith.constant 0 : i32
    %c0_i32_0 = arith.constant 0 : i32
    return %c0_i32, %arg0 : i32, i32
  }
}

</mosaic_0001>

<bundles_post_ra>
// kernel: tpu_custom_call.1
= control target key start
LH: loop header
LB: loop body
LE: loop exit
PB: predicated region body
PF: predicated region fallthrough
CT: control target
= control target key end

     0   :  { %9 = vsyncpa [#allocation3], 0  ;;  %s8730_s0 = inlined_call_operand.vmem [shape: f32[64,8,32], index: 0, kind: input, shape index: {}]   ;;  %s8731_s1 = inlined_call_operand.vmem [shape: f32[32,16], index: 1, kind: input, shape index: {}]   ;;  %s8732_s2 = inlined_call_operand.vmem [shape: f32[32,16], index: 2, kind: input, shape index: {}]   ;;  %s8733_s3 = inlined_call_operand.vmem [shape: f32[32,16], index: 3, kind: input, shape index: {}]   ;;  %s8734_s4 = inlined_call_operand.hbm [shape: f32[8,1024], index: 4, kind: output, shape index: {}]  }
   0x1   :  { %11 = vsyncpa [#allocation3 + $0x1], 0  ;;  %s7594_s15 = smov 0   ;;  %s7596_s16 = smov 0  }
   0x2   :  { %s7598_s17 = smov 0   ;;  %s7600_s18 = smov 0  }
   0x3 LB: > { %s7615_s19 = sadd.s32 4294967295, %s7557_s18   ;;  %s6392_s20 = sadd.s32 4294967294, %s7557_s18   ;;  %s7557_s18 = sphi %s7600_s18, %s8767_s18   ;;  %s7553_s17 = sphi %s7598_s17, %s8766_s17   ;;  %s7549_s16 = sphi %s7596_s16, %s8765_s16   ;;  %s7545_s15 = sphi %s7594_s15, %s8764_s15  }
   0x4   : > { %s7619_s21 = sadd.s32 1, %s7557_s18   ;;  %s113_s22 = sadd.s32 1, %s7553_s17 }
   0x5   : > { %s110_s23 = ssub.s32 %s7557_s18, %s7619_s21  ;;  %p123_p0 = scmp.ne.s32.totalorder %s7553_s17, %s7549_s16 }
   0x6   : > { %p111_p1 = scmp.eq.s32.totalorder %s110_s23, 0  ;;  %p124_p2 = scmp.eq.s32.totalorder %s7615_s19, 1 }
   0x7   : > { %p129_p3 = scmp.ne.s32.totalorder %s7549_s16, %s7545_s15  ;;  %p130_p4 = scmp.eq.s32.totalorder %s6392_s20, 1 }
   0x8   : > { %s7630_s24 = scalar_select %p111_p1, %s7553_s17, %s113_s22  }
   0x9   : > { %p7632_p5 = por %p124_p2, %p123_p0  ;;  %p7636_p6 = por %p130_p4, %p129_p3 }
   0xa   : > { %p6395_p7 = scmp.ge.s32.totalorder %s7557_s18, 1  ;;  %p166_p8 = scmp.lt.s32.totalorder %s7557_s18, 3 }
   0xc   : > { %p167_p9 = pnand %p6395_p7, %p166_p8 }
   0xe   : > { %170 = sbr.rel (%p167_p9) target bundleno = 1007 (0x3ef), region = 36 }
  0x13   : > { %v238_v0 = vld [vmem:[%s8732_s2 + $0x18] sm:$0xff]  ;;  %v237_v2 = vld [vmem:[%s8732_s2 + $0x10] sm:$0xff]  ;;  %s6397_s7 = sshll.u32 %s7615_s19, 5  ;;  %v236_v4 = vld [vmem:[%s8732_s2 + $0x8] sm:$0xff]  ;;  %vm243_vm0 = vcmask 261120   ;;  %v8735_v44 = vmov 0.0  }
  0x14   : > { %v234_v1 = vld [vmem:[%s8731_s1 + $0x18] sm:$0xff]  ;;  %6889 = vmatprep.subr.mxu1 %v238_v0  ;;  %v233_v3 = vld [vmem:[%s8731_s1 + $0x10] sm:$0xff]  ;;  %p193_p10 = scmp.lt.s32.totalorder %s6397_s7, 63  ;;  %v232_v5 = vld [vmem:[%s8731_s1 + $0x8] sm:$0xff]  ;;  %vm7560_vm1 = vmmov 0   ;;  %vm1047_vm2 = vcmask 130048  }
  0x15   : > { %6833 = vmatprep.subr.mxu0 %v234_v1  ;;  %6890 = vmatpush3.msra.mxu1 %v238_v0  ;;  %v235_v6 = vld [vmem:[%s8732_s2] sm:$0xff]  ;;  %v242_v11 = vld [vmem:[%s8733_s3 + $0x18] sm:$0xff]  ;;  %v241_v14 = vld [vmem:[%s8733_s3 + $0x10] sm:$0xff]  ;;  %vm3480_vm3 = vcmask 64512   ;;  %s7561_s13 = smov 16   ;;  %s7562_s14 = smov 32  }
  0x16   : > { %6834 = vmatpush3.msra.mxu0 %v234_v1  ;;  %6891 = vmatprep.subr.mxu1 %v237_v2  ;;  %s8769_s7 = smov (!%p193_p10, %s6397_s7), 63  ;;  %v231_v7 = vld [vmem:[%s8731_s1] sm:$0xff]  ;;  %v240_v17 = vld [vmem:[%s8733_s3 + $0x8] sm:$0xff]  ;;  %s7563_s20 = smov 48   ;;  %vm6227_vm4 = vcmask 392192   ;;  %vm6229_vm5 = vcmask 523264  }
  0x17   : > { %6835 = vmatprep.subr.mxu0 %v233_v3  ;;  %6892 = vmatpush3.msra.mxu1 %v237_v2  ;;  %s6398_s27 = sshll.u32 %s8769_s7, 3  ;;  %v239_v43 = vld [vmem:[%s8733_s3] sm:$0xff]  ;;  %s7564_s22 = smov 64   ;;  %vm6231_vm6 = vcmask 654336   ;;  %vm6233_vm7 = vcmask 785408   ;;  %vm6235_vm8 = vcmask 916480  }
  0x18   : > { %6836 = vmatpush3.msra.mxu0 %v233_v3  ;;  %6893 = vmatprep.subr.mxu1 %v236_v4  ;;  %s7670_s30 = scalar_lea.vmem %s8730_s0, %s6398_s27  ;;  %s7565_s23 = smov 80  }
  0x19   : > { %6837 = vmatprep.subr.mxu0 %v232_v5  ;;  %6894 = vmatpush3.msra.mxu1 %v236_v4  ;;  %v7673_v8 = vld [vmem:[%s7670_s30] sm:$0xff]  ;;  %v7676_v9 = vld [vmem:[%s7670_s30 + $0x8] sm:$0xff]  ;;  %v7681_v10 = vld [vmem:[%s7670_s30 + $0x10] sm:$0xff]  ;;  %s7566_s27 = smov 96   ;;  %s7567_s28 = smov 112  }
  0x1a   : > { %6838 = vmatpush3.msra.mxu0 %v232_v5  ;;  %6895 = vmatprep.subr.mxu1 %v235_v6  ;;  %v7697_v12 = vld [vmem:[%s7670_s30 + $0x18] sm:$0xff]  ;;  %v7700_v13 = vld [vmem:[%s7670_s30 + $0x20] sm:$0xff]  ;;  %v7714_v15 = vld [vmem:[%s7670_s30 + $0x28] sm:$0xff]  ;;  %s189_s29 = sand.u32 1, %s7549_s16   ;;  %s6596_s6 = sshll.u32 %s7615_s19, 9 }
  0x1b   : > { %6839 = vmatprep.subr.mxu0 %v231_v7  ;;  %6896 = vmatpush3.msra.mxu1 %v235_v6  ;;  %v7717_v16 = vld [vmem:[%s7670_s30 + $0x30] sm:$0xff]  ;;  %v7731_v18 = vld [vmem:[%s7670_s30 + $0x38] sm:$0xff]  ;;  %v7734_v19 = vld [vmem:[%s7670_s30 + $0x40] sm:$0xff]  ;;  %s8691_s10 = scalar_lea.hbm %s8734_s4, %s6596_s6  ;;  %s6319_s11 = scalar_lea.sflag [#allocation3], %s189_s29 }
  0x1c   : > { %6897 = vmatprep.mubr.msk.f32.mxu1 %vm243_vm0, %v7673_v8  ;;  %6840 = vmatpush3.msra.mxu0 %v231_v7  ;;  %v7745_v20 = vld [vmem:[%s7670_s30 + $0x48] sm:$0xff]  ;;  %v7748_v21 = vld [vmem:[%s7670_s30 + $0x50] sm:$0xff]  ;;  %v7759_v22 = vld [vmem:[%s7670_s30 + $0x58] sm:$0xff]  ;;  %s7568_s12 = smov [#allocation2]  }
  0x1d   : > { %6841 = vmatprep.mubr.msk.f32.mxu0 %vm243_vm0, %v7673_v8  ;;  %6898 = vmatmul.mubr.msk.f32.vlgmr.msra.gmra.mxu1 %vm243_vm0, %v7676_v9  ;;  %v7762_v23 = vld [vmem:[%s7670_s30 + $0x60] sm:$0xff]  ;;  %v7773_v24 = vld [vmem:[%s7670_s30 + $0x68] sm:$0xff]  ;;  %v7776_v25 = vld [vmem:[%s7670_s30 + $0x70] sm:$0xff] }
  0x1e   : > { %6842 = vmatmul.mubr.msk.f32.vlgmr.msra.gmra.mxu0 %vm243_vm0, %v7676_v9  ;;  %6900 = vmatprep.mubr.msk.f32.mxu1 %vm243_vm0, %v7681_v10  ;;  %v7787_v26 = vld [vmem:[%s7670_s30 + $0x78] sm:$0xff]  ;;  %v7790_v27 = vld [vmem:[%s7670_s30 + $0x80] sm:$0xff]  ;;  %v7801_v28 = vld [vmem:[%s7670_s30 + $0x88] sm:$0xff] }
  0x1f   : > { %6844 = vmatprep.mubr.msk.f32.mxu0 %vm243_vm0, %v7681_v10  ;;  %6945 = vmatprep.subr.mxu0 %v242_v11  ;;  %v7804_v29 = vld [vmem:[%s7670_s30 + $0x90] sm:$0xff]  ;;  %v7815_v30 = vld [vmem:[%s7670_s30 + $0x98] sm:$0xff]  ;;  %v7818_v31 = vld [vmem:[%s7670_s30 + $0xa0] sm:$0xff] }
  0x20   : > { %6946 = vmatpush3.msra.mxu0 %v242_v11  ;;  %v220_v32 = vld [vmem:[%s7670_s30 + $0xa8] sm:$0xff]  ;;  %v221_v33 = vld [vmem:[%s7670_s30 + $0xb0] sm:$0xff]  ;;  %v222_v34 = vld [vmem:[%s7670_s30 + $0xb8] sm:$0xff]  ;;  %7001 = vmatprep.subr.mxu1 %v8735_v44 }
  0x21   : > { %6901 = vmatmul.mubr.msk.f32.gmra.mxu1 %vm243_vm0, %v7697_v12  ;;  %6947 = vmatprep.subr.mxu0 %v241_v14  ;;  %v223_v35 = vld [vmem:[%s7670_s30 + $0xc0] sm:$0xff]  ;;  %v224_v36 = vld [vmem:[%s7670_s30 + $0xc8] sm:$0xff]  ;;  %v225_v37 = vld [vmem:[%s7670_s30 + $0xd0] sm:$0xff] }
  0x22   : > { %6845 = vmatmul.mubr.msk.f32.gmra.mxu0 %vm243_vm0, %v7697_v12  ;;  %6903 = vmatprep.mubr.msk.f32.mxu1 %vm243_vm0, %v7700_v13  ;;  %v226_v38 = vld [vmem:[%s7670_s30 + $0xd8] sm:$0xff]  ;;  %v227_v39 = vld [vmem:[%s7670_s30 + $0xe0] sm:$0xff]  ;;  %v228_v40 = vld [vmem:[%s7670_s30 + $0xe8] sm:$0xff] }
  0x23   : > { %6847 = vmatprep.mubr.msk.f32.mxu0 %vm243_vm0, %v7700_v13  ;;  %6948 = vmatpush3.msra.mxu0 %v241_v14  ;;  %v229_v41 = vld [vmem:[%s7670_s30 + $0xf0] sm:$0xff]  ;;  %v230_v42 = vld [vmem:[%s7670_s30 + $0xf8] sm:$0xff]  ;;  %s6396_s30 = sshll.u32 %s189_s29, 5 }
  0x24   : > { %6949 = vmatprep.subr.mxu0 %v240_v17  ;;  %s8658_s5 = scalar_lea.vmem [#allocation2], %s6396_s30 }
  0x25   : > { %6904 = vmatmul.mubr.msk.f32.gmra.mxu1 %vm243_vm0, %v7714_v15  ;;  %6950 = vmatpush3.msra.mxu0 %v240_v17  ;;  %s6333_s7 = sshll.u32 %s8658_s5, 4  ;;  %s6334_s7 = int_to_ptr.vmem [resolvable:$true] %s6333_s7 }
  0x26   : > { %6848 = vmatmul.mubr.msk.f32.gmra.mxu0 %vm243_vm0, %v7714_v15  ;;  %6906 = vmatprep.mubr.msk.f32.mxu1 %vm243_vm0, %v7717_v16  ;;  %s7497_s19 = scalar_lea.vmem %s6334_s7, 512 }
  0x27   : > { %6850 = vmatprep.mubr.msk.f32.mxu0 %vm243_vm0, %v7717_v16  ;;  %6951 = vmatprep.subr.mxu0 %v239_v43  ;;  %p7498_p11 = scmp.ne.s32.totalorder %s6334_s7, %s7497_s19 }
  0x28   : > { %6952 = vmatpush3.msra.mxu0 %v239_v43 }
  0x29   : > { %6907 = vmatmul.mubr.msk.f32.gmra.mxu1 %vm243_vm0, %v7731_v18  ;;  %7081 = vmatprep.subr.mxu0 %v8735_v44  ;;  %p7499_p12 = pnand %p7498_p11, %p7632_p5 }
  0x2a   : > { %6851 = vmatmul.mubr.msk.f32.gmra.mxu0 %vm243_vm0, %v7731_v18  ;;  %6909 = vmatprep.mubr.msk.f32.mxu1 %vm243_vm0, %v7734_v19 }
  0x2b   : > { %6853 = vmatprep.mubr.msk.f32.mxu0 %vm243_vm0, %v7734_v19  ;;  %p7500_p13 = pneg %p7499_p12 }
  0x2d   : > { %6910 = vmatmul.mubr.msk.f32.gmra.mxu1 %vm243_vm0, %v7745_v20 }
  0x2e   : > { %6854 = vmatmul.mubr.msk.f32.gmra.mxu0 %vm243_vm0, %v7745_v20  ;;  %6912 = vmatprep.mubr.msk.f32.mxu1 %vm243_vm0, %v7748_v21 }
  0x2f   : > { %6856 = vmatprep.mubr.msk.f32.mxu0 %vm243_vm0, %v7748_v21 }
  0x31   : > { %6913 = vmatmul.mubr.msk.f32.gmra.mxu1 %vm243_vm0, %v7759_v22 }
  0x32   : > { %6857 = vmatmul.mubr.msk.f32.gmra.mxu0 %vm243_vm0, %v7759_v22  ;;  %6915 = vmatprep.mubr.msk.f32.mxu1 %vm243_vm0, %v7762_v23 }
  0x33   : > { %6859 = vmatprep.mubr.msk.f32.mxu0 %vm243_vm0, %v7762_v23 }
  0x35   : > { %6916 = vmatmul.mubr.msk.f32.gmra.mxu1 %vm243_vm0, %v7773_v24 }
  0x36   : > { %6860 = vmatmul.mubr.msk.f32.gmra.mxu0 %vm243_vm0, %v7773_v24  ;;  %6918 = vmatprep.mubr.msk.f32.mxu1 %vm243_vm0, %v7776_v25 }
  0x37   : > { %6862 = vmatprep.mubr.msk.f32.mxu0 %vm243_vm0, %v7776_v25 }
  0x39   : > { %6919 = vmatmul.mubr.msk.f32.gmra.mxu1 %vm243_vm0, %v7787_v26 }
  0x3a   : > { %6863 = vmatmul.mubr.msk.f32.gmra.mxu0 %vm243_vm0, %v7787_v26  ;;  %6921 = vmatprep.mubr.msk.f32.mxu1 %vm243_vm0, %v7790_v27 }
  0x3b   : > { %6865 = vmatprep.mubr.msk.f32.mxu0 %vm243_vm0, %v7790_v27 }
  0x3d   : > { %6922 = vmatmul.mubr.msk.f32.gmra.mxu1 %vm243_vm0, %v7801_v28 }
  0x3e   : > { %6866 = vmatmul.mubr.msk.f32.gmra.mxu0 %vm243_vm0, %v7801_v28  ;;  %6924 = vmatprep.mubr.msk.f32.mxu1 %vm243_vm0, %v7804_v29 }
  0x3f   : > { %6868 = vmatprep.mubr.msk.f32.mxu0 %vm243_vm0, %v7804_v29 }
  0x41   : > { %6925 = vmatmul.mubr.msk.f32.gmra.mxu1 %vm243_vm0, %v7815_v30 }
  0x42   : > { %6869 = vmatmul.mubr.msk.f32.gmra.mxu0 %vm243_vm0, %v7815_v30  ;;  %6927 = vmatprep.mubr.msk.f32.mxu1 %vm243_vm0, %v7818_v31 }
  0x43   : > { %6871 = vmatprep.mubr.msk.f32.mxu0 %vm243_vm0, %v7818_v31 }
  0x45   : > { %6928 = vmatmul.mubr.msk.f32.gmra.mxu1 %vm243_vm0, %v220_v32 }
  0x46   : > { %6872 = vmatmul.mubr.msk.f32.gmra.mxu0 %vm243_vm0, %v220_v32  ;;  %6930 = vmatprep.mubr.msk.f32.mxu1 %vm243_vm0, %v221_v33 }
  0x47   : > { %6874 = vmatprep.mubr.msk.f32.mxu0 %vm243_vm0, %v221_v33 }
  0x49   : > { %6931 = vmatmul.mubr.msk.f32.gmra.mxu1 %vm243_vm0, %v222_v34 }
  0x4a   : > { %6875 = vmatmul.mubr.msk.f32.gmra.mxu0 %vm243_vm0, %v222_v34  ;;  %6933 = vmatprep.mubr.msk.f32.mxu1 %vm243_vm0, %v223_v35 }
  0x4b   : > { %6877 = vmatprep.mubr.msk.f32.mxu0 %vm243_vm0, %v223_v35 }
  0x4d   : > { %6934 = vmatmul.mubr.msk.f32.gmra.mxu1 %vm243_vm0, %v224_v36 }
  0x4e   : > { %6878 = vmatmul.mubr.msk.f32.gmra.mxu0 %vm243_vm0, %v224_v36  ;;  %6936 = vmatprep.mubr.msk.f32.mxu1 %vm243_vm0, %v225_v37 }
  0x4f   : > { %6880 = vmatprep.mubr.msk.f32.mxu0 %vm243_vm0, %v225_v37 }
  0x51   : > { %6937 = vmatmul.mubr.msk.f32.gmra.mxu1 %vm243_vm0, %v226_v38 }
  0x52   : > { %6881 = vmatmul.mubr.msk.f32.gmra.mxu0 %vm243_vm0, %v226_v38  ;;  %6939 = vmatprep.mubr.msk.f32.mxu1 %vm243_vm0, %v227_v39 }
  0x53   : > { %6883 = vmatprep.mubr.msk.f32.mxu0 %vm243_vm0, %v227_v39 }
  0x55   : > { %6940 = vmatmul.mubr.msk.f32.gmra.mxu1 %vm243_vm0, %v228_v40 }
  0x56   : > { %6884 = vmatmul.mubr.msk.f32.gmra.mxu0 %vm243_vm0, %v228_v40  ;;  %6942 = vmatprep.mubr.msk.f32.mxu1 %vm243_vm0, %v229_v41 }
  0x57   : > { %6886 = vmatprep.mubr.msk.f32.mxu0 %vm243_vm0, %v229_v41 }
  0x59   : > { %6943 = vmatmul.mubr.msk.f32.gmra.mxu1 %vm243_vm0, %v230_v42 }
  0x5a   : > { %6887 = vmatmul.mubr.msk.f32.gmra.mxu0 %vm243_vm0, %v230_v42  ;;  %7003 = vmatprep.mubr.msk.f32.mxu1 %vm7560_vm1, %v8735_v44 }
  0x5b   : > { %6953 = vmatprep.mubr.msk.f32.mxu0 %vm243_vm0, %v7673_v8 }
  0x5e   : > { %6954 = vmatmul.mubr.msk.f32.vlgmr.msra.gmra.mxu0 %vm243_vm0, %v7676_v9 }
  0x5f   : > { %6956 = vmatprep.mubr.msk.f32.mxu0 %vm243_vm0, %v7681_v10 }
  0x62   : > { %6957 = vmatmul.mubr.msk.f32.gmra.mxu0 %vm243_vm0, %v7697_v12 }
  0x63   : > { %6959 = vmatprep.mubr.msk.f32.mxu0 %vm243_vm0, %v7700_v13 }
  0x66   : > { %6960 = vmatmul.mubr.msk.f32.gmra.mxu0 %vm243_vm0, %v7714_v15 }
  0x67   : > { %6962 = vmatprep.mubr.msk.f32.mxu0 %vm243_vm0, %v7717_v16 }
  0x6a   : > { %6963 = vmatmul.mubr.msk.f32.gmra.mxu0 %vm243_vm0, %v7731_v18 }
  0x6b   : > { %6965 = vmatprep.mubr.msk.f32.mxu0 %vm243_vm0, %v7734_v19 }
  0x6e   : > { %6966 = vmatmul.mubr.msk.f32.gmra.mxu0 %vm243_vm0, %v7745_v20 }
  0x6f   : > { %6968 = vmatprep.mubr.msk.f32.mxu0 %vm243_vm0, %v7748_v21 }
  0x72   : > { %6969 = vmatmul.mubr.msk.f32.gmra.mxu0 %vm243_vm0, %v7759_v22 }
  0x73   : > { %6971 = vmatprep.mubr.msk.f32.mxu0 %vm243_vm0, %v7762_v23 }
  0x76   : > { %6972 = vmatmul.mubr.msk.f32.gmra.mxu0 %vm243_vm0, %v7773_v24 }
  0x77   : > { %6974 = vmatprep.mubr.msk.f32.mxu0 %vm243_vm0, %v7776_v25 }
  0x7a   : > { %6975 = vmatmul.mubr.msk.f32.gmra.mxu0 %vm243_vm0, %v7787_v26 }
  0x7b   : > { %6977 = vmatprep.mubr.msk.f32.mxu0 %vm243_vm0, %v7790_v27 }
  0x7e   : > { %6978 = vmatmul.mubr.msk.f32.gmra.mxu0 %vm243_vm0, %v7801_v28 }
  0x7f   : > { %6980 = vmatprep.mubr.msk.f32.mxu0 %vm243_vm0, %v7804_v29 }
  0x82   : > { %6981 = vmatmul.mubr.msk.f32.gmra.mxu0 %vm243_vm0, %v7815_v30 }
  0x83   : > { %6983 = vmatprep.mubr.msk.f32.mxu0 %vm243_vm0, %v7818_v31 }
  0x86   : > { %6984 = vmatmul.mubr.msk.f32.gmra.mxu0 %vm243_vm0, %v220_v32 }
  0x87   : > { %6986 = vmatprep.mubr.msk.f32.mxu0 %vm243_vm0, %v221_v33 }
  0x8a   : > { %6987 = vmatmul.mubr.msk.f32.gmra.mxu0 %vm243_vm0, %v222_v34 }
  0x8b   : > { %6989 = vmatprep.mubr.msk.f32.mxu0 %vm243_vm0, %v223_v35 }
  0x8e   : > { %6990 = vmatmul.mubr.msk.f32.gmra.mxu0 %vm243_vm0, %v224_v36 }
  0x8f   : > { %6992 = vmatprep.mubr.msk.f32.mxu0 %vm243_vm0, %v225_v37 }
  0x92   : > { %6993 = vmatmul.mubr.msk.f32.gmra.mxu0 %vm243_vm0, %v226_v38 }
  0x93   : > { %6995 = vmatprep.mubr.msk.f32.mxu0 %vm243_vm0, %v227_v39 }
  0x96   : > { %6996 = vmatmul.mubr.msk.f32.gmra.mxu0 %vm243_vm0, %v228_v40 }
  0x97   : > { %6998 = vmatprep.mubr.msk.f32.mxu0 %vm243_vm0, %v229_v41 }
  0x9a   : > { %6999 = vmatmul.mubr.msk.f32.gmra.mxu0 %vm243_vm0, %v230_v42 }
  0x9b   : > { %7083 = vmatprep.mubr.msk.f32.mxu0 %vm7560_vm1, %v8735_v44 }
  0xdd   : > { %v6899_v45 = vpop.f32.mrf.mxu1 }
  0xde   : > { %v6843_v46 = vpop.f32.mrf.mxu0 }
  0xdf   : > { %v631_v47 = vpop.f32.mrf.mxu1  ;;  %v1016_v54 = vmul.f32 0.25, %v6843_v46 }
  0xe0   : > { %v406_v48 = vpop.f32.mrf.mxu0  ;;  %7002 = vmatpush3.xpose.msk.msra.mxu1 %vm1047_vm2, %v631_v47 }
  0xe1   : > { %v1015_v49 = vmul.f32 0.25, %v406_v48  ;;  %7006 = vmatprep.subr.mxu1 %v8735_v44  ;;  %v6902_v50 = vpop.f32.mrf.mxu1 }
  0xe2   : > { %v6846_v51 = vpop.f32.mrf.mxu0 }
  0xe3   : > { %7004 = vmatmul.mubr.msk.f32.vlgmr.msra.gmra.mxu1 %vm1047_vm2, %v1015_v49  ;;  %v641_v52 = vpop.f32.mrf.mxu1  ;;  %v1018_v0 = vmul.f32 0.25, %v6846_v51 }
  0xe4   : > { %v416_v53 = vpop.f32.mrf.mxu0  ;;  %7007 = vmatpush3.xpose.msk.msra.mxu1 %vm1047_vm2, %v6899_v45  ;;  %7008 = vmatprep.mubr.msk.f32.mxu1 %vm7560_vm1, %v8735_v44 }
  0xe5   : > { %7011 = vmatprep.subr.mxu1 %v8735_v44  ;;  %v6905_v55 = vpop.f32.mrf.mxu1  ;;  %v1017_v59 = vmul.f32 0.25, %v416_v53 }
  0xe6   : > { %v6849_v56 = vpop.f32.mrf.mxu0 }
  0xe7   : > { %7009 = vmatmul.mubr.msk.f32.vlgmr.msra.gmra.mxu1 %vm1047_vm2, %v1016_v54  ;;  %v651_v57 = vpop.f32.mrf.mxu1  ;;  %v1020_v10 = vmul.f32 0.25, %v6849_v56 }
  0xe8   : > { %v426_v58 = vpop.f32.mrf.mxu0  ;;  %7012 = vmatpush3.xpose.msk.msra.mxu1 %vm1047_vm2, %v641_v52  ;;  %7013 = vmatprep.mubr.msk.f32.mxu1 %vm7560_vm1, %v8735_v44 }
  0xe9   : > { %7016 = vmatprep.subr.mxu1 %v8735_v44  ;;  %v6908_v60 = vpop.f32.mrf.mxu1  ;;  %v1019_v5 = vmul.f32 0.25, %v426_v58 }
  0xea   : > { %v6852_v61 = vpop.f32.mrf.mxu0 }
  0xeb   : > { %7014 = vmatmul.mubr.msk.f32.vlgmr.msra.gmra.mxu1 %vm1047_vm2, %v1017_v59  ;;  %v661_v62 = vpop.f32.mrf.mxu1  ;;  %v1022_v20 = vmul.f32 0.25, %v6852_v61 }
  0xec   : > { %v436_v63 = vpop.f32.mrf.mxu0  ;;  %7017 = vmatpush3.xpose.msk.msra.mxu1 %vm1047_vm2, %v6902_v50  ;;  %7018 = vmatprep.mubr.msk.f32.mxu1 %vm7560_vm1, %v8735_v44 }
  0xed   : > { %7021 = vmatprep.subr.mxu1 %v8735_v44  ;;  %v6911_v1 = vpop.f32.mrf.mxu1  ;;  %v1021_v15 = vmul.f32 0.25, %v436_v63 }
  0xee   : > { %v6855_v2 = vpop.f32.mrf.mxu0 }
  0xef   : > { %7019 = vmatmul.mubr.msk.f32.vlgmr.msra.gmra.mxu1 %vm1047_vm2, %v1018_v0  ;;  %v671_v3 = vpop.f32.mrf.mxu1  ;;  %v1024_v31 = vmul.f32 0.25, %v6855_v2 }
  0xf0   : > { %v446_v4 = vpop.f32.mrf.mxu0  ;;  %7022 = vmatpush3.xpose.msk.msra.mxu1 %vm1047_vm2, %v651_v57  ;;  %7023 = vmatprep.mubr.msk.f32.mxu1 %vm7560_vm1, %v8735_v44 }
  0xf1   : > { %7026 = vmatprep.subr.mxu1 %v8735_v44  ;;  %v7945_v6 = vpop.f32.mrf.mxu1  ;;  %v1023_v25 = vmul.f32 0.25, %v446_v4 }
  0xf2   : > { %v7947_v7 = vpop.f32.mrf.mxu0 }
  0xf3   : > { %7024 = vmatmul.mubr.msk.f32.vlgmr.msra.gmra.mxu1 %vm1047_vm2, %v1019_v5  ;;  %v681_v8 = vpop.f32.mrf.mxu1  ;;  %v1026_v43 = vmul.f32 0.25, %v7947_v7 }
  0xf4   : > { %v456_v9 = vpop.f32.mrf.mxu0  ;;  %7027 = vmatpush3.xpose.msk.msra.mxu1 %vm1047_vm2, %v6905_v55  ;;  %7028 = vmatprep.mubr.msk.f32.mxu1 %vm7560_vm1, %v8735_v44 }
  0xf5   : > { %7031 = vmatprep.subr.mxu1 %v8735_v44  ;;  %v7954_v11 = vpop.f32.mrf.mxu1  ;;  %v1025_v37 = vmul.f32 0.25, %v456_v9 }
  0xf6   : > { %v7956_v12 = vpop.f32.mrf.mxu0 }
  0xf7   : > { %7029 = vmatmul.mubr.msk.f32.vlgmr.msra.gmra.mxu1 %vm1047_vm2, %v1020_v10  ;;  %v7959_v13 = vpop.f32.mrf.mxu1  ;;  %v1028_v56 = vmul.f32 0.25, %v7956_v12 }
  0xf8   : > { %v7961_v14 = vpop.f32.mrf.mxu0  ;;  %7032 = vmatpush3.xpose.msk.msra.mxu1 %vm1047_vm2, %v661_v62  ;;  %7033 = vmatprep.mubr.msk.f32.mxu1 %vm7560_vm1, %v8735_v44 }
  0xf9   : > { %7036 = vmatprep.subr.mxu1 %v8735_v44  ;;  %v7967_v16 = vpop.f32.mrf.mxu1  ;;  %v1027_v50 = vmul.f32 0.25, %v7961_v14 }
  0xfa   : > { %v7969_v17 = vpop.f32.mrf.mxu0 }
  0xfb   : > { %7034 = vmatmul.mubr.msk.f32.vlgmr.msra.gmra.mxu1 %vm1047_vm2, %v1021_v15  ;;  %v7972_v18 = vpop.f32.mrf.mxu1  ;;  %v1030_v4 = vmul.f32 0.25, %v7969_v17 }
  0xfc   : > { %v7974_v19 = vpop.f32.mrf.mxu0  ;;  %7037 = vmatpush3.xpose.msk.msra.mxu1 %vm1047_vm2, %v6908_v60  ;;  %7038 = vmatprep.mubr.msk.f32.mxu1 %vm7560_vm1, %v8735_v44 }
  0xfd   : > { %7041 = vmatprep.subr.mxu1 %v8735_v44  ;;  %v7980_v21 = vpop.f32.mrf.mxu1  ;;  %v1029_v62 = vmul.f32 0.25, %v7974_v19 }
  0xfe   : > { %v7982_v22 = vpop.f32.mrf.mxu0 }
  0xff   : > { %7039 = vmatmul.mubr.msk.f32.vlgmr.msra.gmra.mxu1 %vm1047_vm2, %v1022_v20  ;;  %v711_v23 = vpop.f32.mrf.mxu1  ;;  %v1032_v7 = vmul.f32 0.25, %v7982_v22 }
 0x100   : > { %v486_v24 = vpop.f32.mrf.mxu0  ;;  %7042 = vmatpush3.xpose.msk.msra.mxu1 %vm1047_vm2, %v671_v3  ;;  %7043 = vmatprep.mubr.msk.f32.mxu1 %vm7560_vm1, %v8735_v44 }
 0x101   : > { %7046 = vmatprep.subr.mxu1 %v8735_v44  ;;  %v1031_v26 = vmul.f32 0.25, %v486_v24  ;;  %7082 = vmatpush3.xpose.msk.msra.mxu0 %vm1047_vm2, %v711_v23  ;;  %v7990_v27 = vpop.f32.mrf.mxu1 }
 0x102   : > { %v7992_v28 = vpop.f32.mrf.mxu0  ;;  %7091 = vmatprep.subr.mxu0 %v8735_v44 }
 0x103   : > { %7044 = vmatmul.mubr.msk.f32.vlgmr.msra.gmra.mxu1 %vm1047_vm2, %v1023_v25  ;;  %v721_v29 = vpop.f32.mrf.mxu1  ;;  %v1034_v9 = vmul.f32 0.25, %v7992_v28 }
 0x104   : > { %v496_v30 = vpop.f32.mrf.mxu0  ;;  %7047 = vmatpush3.xpose.msk.msra.mxu1 %vm1047_vm2, %v6911_v1  ;;  %7048 = vmatprep.mubr.msk.f32.mxu1 %vm7560_vm1, %v8735_v44 }
 0x105   : > { %7051 = vmatprep.subr.mxu1 %v8735_v44  ;;  %7084 = vmatmul.mubr.msk.f32.vlgmr.msra.gmra.mxu0 %vm1047_vm2, %v1031_v26  ;;  %v1033_v32 = vmul.f32 0.25, %v496_v30  ;;  %v8001_v33 = vpop.f32.mrf.mxu1 }
 0x106   : > { %v8003_v34 = vpop.f32.mrf.mxu0  ;;  %7092 = vmatpush3.xpose.msk.msra.mxu0 %vm1047_vm2, %v721_v29  ;;  %7093 = vmatprep.mubr.msk.f32.mxu0 %vm7560_vm1, %v8735_v44 }
 0x107   : > { %7049 = vmatmul.mubr.msk.f32.vlgmr.msra.gmra.mxu1 %vm1047_vm2, %v1024_v31  ;;  %v731_v35 = vpop.f32.mrf.mxu1  ;;  %7101 = vmatprep.subr.mxu0 %v8735_v44  ;;  %v1036_v10 = vmul.f32 0.25, %v8003_v34 }
 0x108   : > { %v506_v36 = vpop.f32.mrf.mxu0  ;;  %7052 = vmatpush3.xpose.msk.msra.mxu1 %vm1047_vm2, %v681_v8  ;;  %7053 = vmatprep.mubr.msk.f32.mxu1 %vm7560_vm1, %v8735_v44 }
 0x109   : > { %7056 = vmatprep.subr.mxu1 %v8735_v44  ;;  %7094 = vmatmul.mubr.msk.f32.vlgmr.msra.gmra.mxu0 %vm1047_vm2, %v1033_v32  ;;  %v1035_v38 = vmul.f32 0.25, %v506_v36  ;;  %v8015_v39 = vpop.f32.mrf.mxu1 }
 0x10a   : > { %v8017_v40 = vpop.f32.mrf.mxu0  ;;  %7102 = vmatpush3.xpose.msk.msra.mxu0 %vm1047_vm2, %v731_v35  ;;  %7103 = vmatprep.mubr.msk.f32.mxu0 %vm7560_vm1, %v8735_v44 }
 0x10b   : > { %7054 = vmatmul.mubr.msk.f32.vlgmr.msra.gmra.mxu1 %vm1047_vm2, %v1025_v37  ;;  %v741_v41 = vpop.f32.mrf.mxu1  ;;  %7111 = vmatprep.subr.mxu0 %v8735_v44 }
 0x10c   : > { %v516_v42 = vpop.f32.mrf.mxu0  ;;  %7057 = vmatpush3.xpose.msk.msra.mxu1 %vm1047_vm2, %v7945_v6  ;;  %7058 = vmatprep.mubr.msk.f32.mxu1 %vm7560_vm1, %v8735_v44 }
 0x10d   : > { %7061 = vmatprep.subr.mxu1 %v8735_v44  ;;  %7104 = vmatmul.mubr.msk.f32.vlgmr.msra.gmra.mxu0 %vm1047_vm2, %v1035_v38  ;;  %v1037_v45 = vmul.f32 0.25, %v516_v42  ;;  %v8031_v46 = vpop.f32.mrf.mxu1 }
 0x10e   : > { %v8033_v47 = vpop.f32.mrf.mxu0  ;;  %7112 = vmatpush3.xpose.msk.msra.mxu0 %vm1047_vm2, %v741_v41  ;;  %7113 = vmatprep.mubr.msk.f32.mxu0 %vm7560_vm1, %v8735_v44 }
 0x10f   : > { %7059 = vmatmul.mubr.msk.f32.vlgmr.msra.gmra.mxu1 %vm1047_vm2, %v1026_v43  ;;  %v751_v48 = vpop.f32.mrf.mxu1  ;;  %7121 = vmatprep.subr.mxu0 %v8735_v44  ;;  %v1040_v12 = vmul.f32 0.25, %v8033_v47 }
 0x110   : > { %v526_v49 = vpop.f32.mrf.mxu0  ;;  %7062 = vmatpush3.xpose.msk.msra.mxu1 %vm1047_vm2, %v7959_v13  ;;  %7063 = vmatprep.mubr.msk.f32.mxu1 %vm7560_vm1, %v8735_v44 }
 0x111   : > { %7066 = vmatprep.subr.mxu1 %v8735_v44  ;;  %7114 = vmatmul.mubr.msk.f32.vlgmr.msra.gmra.mxu0 %vm1047_vm2, %v1037_v45  ;;  %v1039_v51 = vmul.f32 0.25, %v526_v49  ;;  %v8047_v52 = vpop.f32.mrf.mxu1 }
 0x112   : > { %v8049_v53 = vpop.f32.mrf.mxu0  ;;  %7122 = vmatpush3.xpose.msk.msra.mxu0 %vm1047_vm2, %v751_v48  ;;  %7123 = vmatprep.mubr.msk.f32.mxu0 %vm7560_vm1, %v8735_v44 }
 0x113   : > { %7064 = vmatmul.mubr.msk.f32.vlgmr.msra.gmra.mxu1 %vm1047_vm2, %v1027_v50  ;;  %v761_v54 = vpop.f32.mrf.mxu1  ;;  %7131 = vmatprep.subr.mxu0 %v8735_v44  ;;  %v1042_v13 = vmul.f32 0.25, %v8049_v53 }
 0x114   : > { %v536_v55 = vpop.f32.mrf.mxu0  ;;  %7067 = vmatpush3.xpose.msk.msra.mxu1 %vm1047_vm2, %v7954_v11  ;;  %7068 = vmatprep.mubr.msk.f32.mxu1 %vm7560_vm1, %v8735_v44  ;;  %v1038_v11 = vmul.f32 0.25, %v8017_v40 }
 0x115   : > { %7071 = vmatprep.subr.mxu1 %v8735_v44  ;;  %7124 = vmatmul.mubr.msk.f32.vlgmr.msra.gmra.mxu0 %vm1047_vm2, %v1039_v51  ;;  %v1041_v57 = vmul.f32 0.25, %v536_v55  ;;  %v8063_v58 = vpop.f32.mrf.mxu1 }
 0x116   : > { %v8065_v59 = vpop.f32.mrf.mxu0  ;;  %7132 = vmatpush3.xpose.msk.msra.mxu0 %vm1047_vm2, %v761_v54  ;;  %7133 = vmatprep.mubr.msk.f32.mxu0 %vm7560_vm1, %v8735_v44 }
 0x117   : > { %7069 = vmatmul.mubr.msk.f32.vlgmr.msra.gmra.mxu1 %vm1047_vm2, %v1028_v56  ;;  %v771_v60 = vpop.f32.mrf.mxu1  ;;  %7141 = vmatprep.subr.mxu0 %v8735_v44  ;;  %v1044_v14 = vmul.f32 0.25, %v8065_v59 }
 0x118   : > { %v546_v61 = vpop.f32.mrf.mxu0  ;;  %7072 = vmatpush3.xpose.msk.msra.mxu1 %vm1047_vm2, %v7972_v18  ;;  %7073 = vmatprep.mubr.msk.f32.mxu1 %vm7560_vm1, %v8735_v44 }
 0x119   : > { %7076 = vmatprep.subr.mxu1 %v8735_v44  ;;  %7134 = vmatmul.mubr.msk.f32.vlgmr.msra.gmra.mxu0 %vm1047_vm2, %v1041_v57  ;;  %v1043_v63 = vmul.f32 0.25, %v546_v61  ;;  %v6944_v0 = vpop.f32.mrf.mxu1 }
 0x11a   : > { %v6888_v1 = vpop.f32.mrf.mxu0  ;;  %7142 = vmatpush3.xpose.msk.msra.mxu0 %vm1047_vm2, %v771_v60  ;;  %7143 = vmatprep.mubr.msk.f32.mxu0 %vm7560_vm1, %v8735_v44 }
 0x11b   : > { %7074 = vmatmul.mubr.msk.f32.vlgmr.msra.gmra.mxu1 %vm1047_vm2, %v1029_v62  ;;  %v781_v2 = vpop.f32.mrf.mxu1  ;;  %7151 = vmatprep.subr.mxu0 %v8735_v44  ;;  %v1046_v15 = vmul.f32 0.25, %v6888_v1 }
 0x11c   : > { %v556_v3 = vpop.f32.mrf.mxu0  ;;  %7077 = vmatpush3.xpose.msk.msra.mxu1 %vm1047_vm2, %v7967_v16  ;;  %7078 = vmatprep.mubr.msk.f32.mxu1 %vm7560_vm1, %v8735_v44 }
 0x11d   : > { %7086 = vmatprep.subr.mxu1 %v8735_v44  ;;  %7144 = vmatmul.mubr.msk.f32.vlgmr.msra.gmra.mxu0 %vm1047_vm2, %v1043_v63  ;;  %v1045_v5 = vmul.f32 0.25, %v556_v3 }
 0x11e   : > { %7152 = vmatpush3.xpose.msk.msra.mxu0 %vm1047_vm2, %v781_v2  ;;  %7153 = vmatprep.mubr.msk.f32.mxu0 %vm7560_vm1, %v8735_v44  ;;  %v6955_v6 = vpop.f32.mrf.mxu0 }
 0x11f   : > { %7079 = vmatmul.mubr.msk.f32.vlgmr.msra.gmra.mxu1 %vm1047_vm2, %v1030_v4  ;;  %7161 = vmatprep.subr.mxu0 %v8735_v44 }
 0x120   : > { %7087 = vmatpush3.xpose.msk.msra.mxu1 %vm1047_vm2, %v7980_v21  ;;  %7088 = vmatprep.mubr.msk.f32.mxu1 %vm7560_vm1, %v8735_v44  ;;  %v856_v8 = vpop.f32.mrf.mxu0 }
 0x121   : > { %7096 = vmatprep.subr.mxu1 %v8735_v44  ;;  %7154 = vmatmul.mubr.msk.f32.vlgmr.msra.gmra.mxu0 %vm1047_vm2, %v1045_v5 }
 0x122   : > { %7162 = vmatpush3.msra.mxu0 %v856_v8  ;;  %7163 = vmatprep.mubr.msk.f32.mxu0 %vm7560_vm1, %v8735_v44  ;;  %v8157_v16 = vpop.f32.mrf.mxu0 }
 0x123   : > { %7089 = vmatmul.mubr.msk.f32.vlgmr.msra.gmra.mxu1 %vm1047_vm2, %v1032_v7  ;;  %7171 = vmatprep.subr.mxu0 %v8735_v44 }
 0x124   : > { %7097 = vmatpush3.xpose.msk.msra.mxu1 %vm1047_vm2, %v7990_v27  ;;  %7098 = vmatprep.mubr.msk.f32.mxu1 %vm7560_vm1, %v8735_v44  ;;  %v8159_v17 = vpop.f32.mrf.mxu0 }
 0x125   : > { %7106 = vmatprep.subr.mxu1 %v8735_v44 }
 0x126   : > { %v8161_v18 = vpop.f32.mrf.mxu0 }
 0x127   : > { %7099 = vmatmul.mubr.msk.f32.vlgmr.msra.gmra.mxu1 %vm1047_vm2, %v1034_v9 }
 0x128   : > { %7107 = vmatpush3.xpose.msk.msra.mxu1 %vm1047_vm2, %v8001_v33  ;;  %7108 = vmatprep.mubr.msk.f32.mxu1 %vm7560_vm1, %v8735_v44  ;;  %v8163_v19 = vpop.f32.mrf.mxu0 }
 0x129   : > { %7116 = vmatprep.subr.mxu1 %v8735_v44 }
 0x12a   : > { %v8165_v20 = vpop.f32.mrf.mxu0 }
 0x12b   : > { %7109 = vmatmul.mubr.msk.f32.vlgmr.msra.gmra.mxu1 %vm1047_vm2, %v1036_v10 }
 0x12c   : > { %7117 = vmatpush3.xpose.msk.msra.mxu1 %vm1047_vm2, %v8015_v39  ;;  %7118 = vmatprep.mubr.msk.f32.mxu1 %vm7560_vm1, %v8735_v44  ;;  %v8167_v21 = vpop.f32.mrf.mxu0 }
 0x12d   : > { %7126 = vmatprep.subr.mxu1 %v8735_v44 }
 0x12e   : > { %v8169_v22 = vpop.f32.mrf.mxu0 }
 0x12f   : > { %7119 = vmatmul.mubr.msk.f32.vlgmr.msra.gmra.mxu1 %vm1047_vm2, %v1038_v11 }
 0x130   : > { %7127 = vmatpush3.xpose.msk.msra.mxu1 %vm1047_vm2, %v8031_v46  ;;  %7128 = vmatprep.mubr.msk.f32.mxu1 %vm7560_vm1, %v8735_v44  ;;  %v8171_v23 = vpop.f32.mrf.mxu0 }
 0x131   : > { %7136 = vmatprep.subr.mxu1 %v8735_v44 }
 0x132   : > { %v8173_v24 = vpop.f32.mrf.mxu0 }
 0x133   : > { %7129 = vmatmul.mubr.msk.f32.vlgmr.msra.gmra.mxu1 %vm1047_vm2, %v1040_v12 }
 0x134   : > { %7137 = vmatpush3.xpose.msk.msra.mxu1 %vm1047_vm2, %v8047_v52  ;;  %7138 = vmatprep.mubr.msk.f32.mxu1 %vm7560_vm1, %v8735_v44  ;;  %v8175_v25 = vpop.f32.mrf.mxu0 }
 0x135   : > { %7146 = vmatprep.subr.mxu1 %v8735_v44 }
 0x136   : > { %v8177_v26 = vpop.f32.mrf.mxu0 }
 0x137   : > { %7139 = vmatmul.mubr.msk.f32.vlgmr.msra.gmra.mxu1 %vm1047_vm2, %v1042_v13 }
 0x138   : > { %7147 = vmatpush3.xpose.msk.msra.mxu1 %vm1047_vm2, %v8063_v58  ;;  %7148 = vmatprep.mubr.msk.f32.mxu1 %vm7560_vm1, %v8735_v44  ;;  %v8179_v27 = vpop.f32.mrf.mxu0 }
 0x139   : > { %7156 = vmatprep.subr.mxu1 %v8735_v44 }
 0x13a   : > { %v8181_v28 = vpop.f32.mrf.mxu0 }
 0x13b   : > { %7149 = vmatmul.mubr.msk.f32.vlgmr.msra.gmra.mxu1 %vm1047_vm2, %v1044_v14 }
 0x13c   : > { %7157 = vmatpush3.xpose.msk.msra.mxu1 %vm1047_vm2, %v6944_v0  ;;  %7158 = vmatprep.mubr.msk.f32.mxu1 %vm7560_vm1, %v8735_v44  ;;  %v8183_v29 = vpop.f32.mrf.mxu0 }
 0x13d   : > { %7166 = vmatprep.subr.mxu1 %v8735_v44 }
 0x13e   : > { %v8185_v30 = vpop.f32.mrf.mxu0 }
 0x13f   : > { %7159 = vmatmul.mubr.msk.f32.vlgmr.msra.gmra.mxu1 %vm1047_vm2, %v1046_v15 }
 0x140   : > { %7167 = vmatpush3.msra.mxu1 %v6955_v6  ;;  %7168 = vmatprep.mubr.msk.f32.mxu1 %vm7560_vm1, %v8735_v44  ;;  %v8187_v31 = vpop.f32.mrf.mxu0 }
 0x141   : > { %7176 = vmatprep.subr.mxu1 %v8735_v44 }
 0x142   : > { %v8189_v32 = vpop.f32.mrf.mxu0 }
 0x144   : > { %v8191_v33 = vpop.f32.mrf.mxu0 }
 0x146   : > { %v8193_v34 = vpop.f32.mrf.mxu0 }
 0x148   : > { %v8195_v35 = vpop.f32.mrf.mxu0 }
 0x14a   : > { %v8197_v36 = vpop.f32.mrf.mxu0 }
 0x14b   : > { %8741 = vst [vmem:[#allocation5_spill] sm:$0xff] %v8197_v36 }
 0x14c   : > { %v8199_v37 = vpop.f32.mrf.mxu0 }
 0x14e   : > { %v8205_v41 = vpop.f32.mrf.mxu0 }
 0x14f   : > { %8742 = vst [vmem:[#allocation6_spill] sm:$0xff] %v8205_v41 }
 0x150   : > { %v8211_v46 = vpop.f32.mrf.mxu0 }
 0x151   : > { %8743 = vst [vmem:[#allocation7_spill] sm:$0xff] %v8211_v46 }
 0x152   : > { %v8217_v50 = vpop.f32.mrf.mxu0 }
 0x153   : > { %8744 = vst [vmem:[#allocation8_spill] sm:$0xff] %v8217_v50 }
 0x154   : > { %v8223_v54 = vpop.f32.mrf.mxu0 }
 0x155   : > { %8745 = vst [vmem:[#allocation9_spill] sm:$0xff] %v8223_v54 }
 0x156   : > { %v8229_v58 = vpop.f32.mrf.mxu0 }
 0x157   : > { %8746 = vst [vmem:[#allocation10_spill] sm:$0xff] %v8229_v58 }
 0x158   : > { %v8235_v62 = vpop.f32.mrf.mxu0 }
 0x159   : > { %8747 = vst [vmem:[#allocation11_spill] sm:$0xff] %v8235_v62 }
 0x15a   : > { %v8241_v2 = vpop.f32.mrf.mxu0 }
 0x15b   : > { %8748 = vst [vmem:[#allocation12_spill] sm:$0xff] %v8241_v2 }
 0x15c   : > { %v8247_v6 = vpop.f32.mrf.mxu0 }
 0x15d   : > { %8749 = vst [vmem:[#allocation13_spill] sm:$0xff] %v8247_v6 }
 0x1a3   : > { %v8201_v38 = vpop.f32.mrf.mxu1 }
 0x1a4   : > { %v3481_v39 = vsel %vm3480_vm3, %v8201_v38, -inf }
 0x1a5   : > { %3482 = vmax.xlane.f32.xlu0 %v3481_v39  ;;  %v7005_v40 = vpop.f32.mrf.mxu1 }
 0x1a7   : > { %v8207_v42 = vpop.f32.mrf.mxu1 }
 0x1a8   : > { %v3484_v43 = vsel %vm3480_vm3, %v8207_v42, -inf }
 0x1a9   : > { %3485 = vmax.xlane.f32.xlu0 %v3484_v43  ;;  %v7010_v45 = vpop.f32.mrf.mxu1 }
 0x1ab   : > { %v8213_v47 = vpop.f32.mrf.mxu1 }
 0x1ac   : > { %v3487_v48 = vsel %vm3480_vm3, %v8213_v47, -inf }
 0x1ad   : > { %3488 = vmax.xlane.f32.xlu1 %v3487_v48  ;;  %v7015_v49 = vpop.f32.mrf.mxu1 }
 0x1af   : > { %v8219_v51 = vpop.f32.mrf.mxu1 }
 0x1b0   : > { %v3490_v52 = vsel %vm3480_vm3, %v8219_v51, -inf }
 0x1b1   : > { %3491 = vmax.xlane.f32.xlu1 %v3490_v52  ;;  %v7020_v53 = vpop.f32.mrf.mxu1 }
 0x1b3   : > { %v8225_v55 = vpop.f32.mrf.mxu1 }
 0x1b4   : > { %v3493_v56 = vsel %vm3480_vm3, %v8225_v55, -inf }
 0x1b5   : > { %3494 = vmax.xlane.f32.xlu0 %v3493_v56  ;;  %v7025_v57 = vpop.f32.mrf.mxu1 }
 0x1b7   : > { %v8231_v59 = vpop.f32.mrf.mxu1 }
 0x1b8   : > { %v3496_v60 = vsel %vm3480_vm3, %v8231_v59, -inf }
 0x1b9   : > { %3497 = vmax.xlane.f32.xlu1 %v3496_v60  ;;  %v7030_v61 = vpop.f32.mrf.mxu1 }
 0x1bb   : > { %v8237_v63 = vpop.f32.mrf.mxu1 }
 0x1bc   : > { %v3499_v0 = vsel %vm3480_vm3, %v8237_v63, -inf }
 0x1bd   : > { %3500 = vmax.xlane.f32.xlu0 %v3499_v0  ;;  %v7035_v1 = vpop.f32.mrf.mxu1 }
 0x1bf   : > { %v8243_v3 = vpop.f32.mrf.mxu1 }
 0x1c0   : > { %v3502_v4 = vsel %vm3480_vm3, %v8243_v3, -inf }
 0x1c1   : > { %3503 = vmax.xlane.f32.xlu1 %v3502_v4  ;;  %v7040_v5 = vpop.f32.mrf.mxu1 }
 0x1c3   : > { %v8249_v7 = vpop.f32.mrf.mxu1 }
 0x1c4   : > { %v3505_v8 = vsel %vm3480_vm3, %v8249_v7, -inf }
 0x1c5   : > { %3506 = vmax.xlane.f32.xlu0 %v3505_v8  ;;  %v7045_v9 = vpop.f32.mrf.mxu1  ;;  %v8253_v10 = vpop.f32.mrf.mxu0 }
 0x1c7   : > { %v8255_v11 = vpop.f32.mrf.mxu1  ;;  %v7085_v12 = vpop.f32.mrf.mxu0 }
 0x1c8   : > { %v3508_v13 = vsel %vm3480_vm3, %v8255_v11, -inf }
 0x1c9   : > { %3509 = vmax.xlane.f32.xlu1 %v3508_v13  ;;  %v7050_v14 = vpop.f32.mrf.mxu1  ;;  %v8259_v15 = vpop.f32.mrf.mxu0 }
 0x1cb   : > { %v8261_v39 = vpop.f32.mrf.mxu1  ;;  %v7095_v40 = vpop.f32.mrf.mxu0 }
 0x1cc   : > { %v3511_v43 = vsel %vm3480_vm3, %v8261_v39, -inf }
 0x1cd   : > { %3512 = vmax.xlane.f32.xlu0 %v3511_v43  ;;  %v7055_v45 = vpop.f32.mrf.mxu1  ;;  %v8265_v48 = vpop.f32.mrf.mxu0 }
 0x1cf   : > { %v8267_v49 = vpop.f32.mrf.mxu1  ;;  %v7105_v52 = vpop.f32.mrf.mxu0 }
 0x1d0   : > { %v3514_v53 = vsel %vm3480_vm3, %v8267_v49, -inf }
 0x1d1   : > { %3515 = vmax.xlane.f32.xlu1 %v3514_v53  ;;  %v7060_v56 = vpop.f32.mrf.mxu1  ;;  %v8271_v57 = vpop.f32.mrf.mxu0  ;;  %v3529_v53 = vsel %vm3480_vm3, %v8253_v10, -inf }
 0x1d3   : > { %v8273_v60 = vpop.f32.mrf.mxu1  ;;  %v7115_v61 = vpop.f32.mrf.mxu0 }
 0x1d4   : > { %v3517_v0 = vsel %vm3480_vm3, %v8273_v60, -inf }
 0x1d5   : > { %3518 = vmax.xlane.f32.xlu0 %v3517_v0  ;;  %v7065_v1 = vpop.f32.mrf.mxu1  ;;  %v8277_v4 = vpop.f32.mrf.mxu0 }
 0x1d7   : > { %v8279_v5 = vpop.f32.mrf.mxu1  ;;  %v7125_v8 = vpop.f32.mrf.mxu0 }
 0x1d8   : > { %v3520_v9 = vsel %vm3480_vm3, %v8279_v5, -inf }
 0x1d9   : > { %3521 = vmax.xlane.f32.xlu1 %v3520_v9  ;;  %v7070_v12 = vpop.f32.mrf.mxu1  ;;  %v8283_v13 = vpop.f32.mrf.mxu0  ;;  %v3535_v9 = vsel %vm3480_vm3, %v8259_v15, -inf }
 0x1db   : > { %v8285_v14 = vpop.f32.mrf.mxu1  ;;  %v7135_v40 = vpop.f32.mrf.mxu0 }
 0x1dc   : > { %v3523_v43 = vsel %vm3480_vm3, %v8285_v14, -inf }
 0x1dd   : > { %3524 = vmax.xlane.f32.xlu0 %v3523_v43  ;;  %v7075_v45 = vpop.f32.mrf.mxu1  ;;  %v8289_v52 = vpop.f32.mrf.mxu0 }
 0x1df   : > { %v8293_v56 = vpop.f32.mrf.mxu1  ;;  %v7145_v61 = vpop.f32.mrf.mxu0 }
 0x1e0   : > { %v3526_v0 = vsel %vm3480_vm3, %v8293_v56, -inf  ;;  %v3541_v61 = vsel %vm3480_vm3, %v8265_v48, -inf }
 0x1e1   : > { %3527 = vmax.xlane.f32.xlu1 %v3526_v0  ;;  %v7080_v1 = vpop.f32.mrf.mxu1  ;;  %3530 = vmax.xlane.f32.xlu0 %v3529_v53  ;;  %v8297_v8 = vpop.f32.mrf.mxu0 }
 0x1e2   : > { %8750 = vst [vmem:[#allocation14_spill] sm:$0xff] %v8297_v8 }
 0x1e3   : > { %v8301_v12 = vpop.f32.mrf.mxu1  ;;  %v7155_v40 = vpop.f32.mrf.mxu0 }
 0x1e4   : > { %v3532_v43 = vsel %vm3480_vm3, %v8301_v12, -inf  ;;  %v3547_v40 = vsel %vm3480_vm3, %v8271_v57, -inf }
 0x1e5   : > { %3533 = vmax.xlane.f32.xlu1 %v3532_v43  ;;  %v7090_v45 = vpop.f32.mrf.mxu1  ;;  %3536 = vmax.xlane.f32.xlu0 %v3535_v9 }
 0x1e6   : > { %v3553_v45 = vsel %vm3480_vm3, %v8277_v4, -inf }
 0x1e7   : > { %v8307_v0 = vpop.f32.mrf.mxu1 }
 0x1e8   : > { %v3538_v53 = vsel %vm3480_vm3, %v8307_v0, -inf }
 0x1e9   : > { %3539 = vmax.xlane.f32.xlu1 %v3538_v53  ;;  %v7100_v1 = vpop.f32.mrf.mxu1  ;;  %3542 = vmax.xlane.f32.xlu0 %v3541_v61 }
 0x1ea   : > { %v3559_v1 = vsel %vm3480_vm3, %v8283_v13, -inf }
 0x1eb   : > { %v8313_v44 = vpop.f32.mrf.mxu1 }
 0x1ec   : > { %v3544_v43 = vsel %vm3480_vm3, %v8313_v44, -inf }
 0x1ed   : > { %3545 = vmax.xlane.f32.xlu1 %v3544_v43  ;;  %v7110_v9 = vpop.f32.mrf.mxu1  ;;  %3548 = vmax.xlane.f32.xlu0 %v3547_v40 }
 0x1ee   : > { %v3565_v9 = vsel %vm3480_vm3, %v8289_v52, -inf }
 0x1ef   : > { %v8319_v2 = vpop.f32.mrf.mxu1 }
 0x1f0   : > { %v3550_v53 = vsel %vm3480_vm3, %v8319_v2, -inf }
 0x1f1   : > { %3551 = vmax.xlane.f32.xlu1 %v3550_v53  ;;  %v7120_v61 = vpop.f32.mrf.mxu1  ;;  %3554 = vmax.xlane.f32.xlu0 %v3553_v45 }
 0x1f2   : > { %v3571_v61 = vsel %vm3480_vm3, %v8297_v8, -inf }
 0x1f3   : > { %v8325_v6 = vpop.f32.mrf.mxu1 }
 0x1f4   : > { %v3556_v43 = vsel %vm3480_vm3, %v8325_v6, -inf }
 0x1f5   : > { %3557 = vmax.xlane.f32.xlu1 %v3556_v43  ;;  %v7130_v40 = vpop.f32.mrf.mxu1  ;;  %3560 = vmax.xlane.f32.xlu0 %v3559_v1 }
 0x1f7   : > { %v8331_v58 = vpop.f32.mrf.mxu1 }
 0x1f8   : > { %v3562_v53 = vsel %vm3480_vm3, %v8331_v58, -inf }
 0x1f9   : > { %3563 = vmax.xlane.f32.xlu1 %v3562_v53  ;;  %v7140_v45 = vpop.f32.mrf.mxu1  ;;  %3566 = vmax.xlane.f32.xlu0 %v3565_v9 }
 0x1fb   : > { %v8337_v62 = vpop.f32.mrf.mxu1 }
 0x1fc   : > { %v3568_v43 = vsel %vm3480_vm3, %v8337_v62, -inf }
 0x1fd   : > { %3569 = vmax.xlane.f32.xlu1 %v3568_v43  ;;  %v7150_v1 = vpop.f32.mrf.mxu1  ;;  %3572 = vmax.xlane.f32.xlu0 %v3571_v61 }
 0x1ff   : > { %v8341_v40 = vpop.f32.mrf.mxu1 }
 0x200   : > { %8751 = vst [vmem:[#allocation15_spill] sm:$0xff] %v8341_v40  ;;  %v3574_v50 = vsel %vm3480_vm3, %v8341_v40, -inf }
 0x201   : > { %3575 = vmax.xlane.f32.xlu1 %v3574_v50  ;;  %v7160_v53 = vpop.f32.mrf.mxu1 }
 0x22e   : > { %v3483_v45 = vpop.xlane.xlu0 %3482 }
 0x22f   : > { %v3577_v9 = vsub.f32 %v8201_v38, %v3483_v45 }
 0x231   : > { %v3609_v54 = vmul.f32 1.442695, %v3577_v9 }
 0x232   : > { %v3486_v41 = vpop.xlane.xlu0 %3485 }
 0x233   : > { %7369 = vpow2.f32 %v3609_v54  ;;  %v3578_v46 = vsub.f32 %v8207_v42, %v3486_v41  ;;  %v8752_v41 = vmov 0.0  }
 0x235   : > { %v3611_v36 = vmul.f32 1.442695, %v3578_v46 }
 0x236   : > { %v3489_v8 = vpop.xlane.xlu1 %3488 }
 0x237   : > { %7371 = vpow2.f32 %v3611_v36  ;;  %v3579_v61 = vsub.f32 %v8213_v47, %v3489_v8 }
 0x239   : > { %v3613_v43 = vmul.f32 1.442695, %v3579_v61 }
 0x23a   : > { %v3492_v1 = vpop.xlane.xlu1 %3491 }
 0x23b   : > { %7373 = vpow2.f32 %v3613_v43  ;;  %v3580_v40 = vsub.f32 %v8219_v51, %v3492_v1 }
 0x23d   : > { %v3615_v50 = vmul.f32 1.442695, %v3580_v40 }
 0x23e   : > { %v3495_v53 = vpop.xlane.xlu0 %3494 }
 0x23f   : > { %7375 = vpow2.f32 %v3615_v50  ;;  %v3581_v38 = vsub.f32 %v8225_v55, %v3495_v53 }
 0x240   : > { %v8350_v45 = vpop.eup %7369 }
 0x241   : > { %v3617_v54 = vmul.f32 1.442695, %v3581_v38  ;;  %7164 = vmatmul.mubr.msk.f32.vlgmr.msra.gmra.mxu0 %vm3480_vm3, %v8350_v45 }
 0x242   : > { %7172 = vmatpush3.msra.mxu0 %v8159_v17  ;;  %v3498_v36 = vpop.xlane.xlu1 %3497  ;;  %7173 = vmatprep.mubr.msk.f32.mxu0 %vm7560_vm1, %v8752_v41 }
 0x243   : > { %7377 = vpow2.f32 %v3617_v54  ;;  %v3582_v42 = vsub.f32 %v8231_v59, %v3498_v36  ;;  %7181 = vmatprep.subr.mxu0 %v8752_v41 }
 0x244   : > { %v7372_v46 = vpop.eup %7371 }
 0x245   : > { %v3619_v47 = vmul.f32 1.442695, %v3582_v42  ;;  %7169 = vmatmul.mubr.msk.f32.vlgmr.msra.gmra.mxu1 %vm3480_vm3, %v7372_v46  ;;  %v3676_v51 = vsel %vm3480_vm3, %v7372_v46, 0.0 }
 0x246   : > { %7177 = vmatpush3.msra.mxu1 %v8157_v16  ;;  %v3501_v55 = vpop.xlane.xlu0 %3500  ;;  %3677 = vadd.xlane.f32.xlu0 %v3676_v51 }
 0x247   : > { %7379 = vpow2.f32 %v3619_v47  ;;  %v3583_v17 = vsub.f32 %v8237_v63, %v3501_v55  ;;  %7178 = vmatprep.mubr.msk.f32.mxu1 %vm7560_vm1, %v8752_v41  ;;  %7186 = vmatprep.subr.mxu1 %v8752_v41 }
 0x248   : > { %v7374_v59 = vpop.eup %7373 }
 0x249   : > { %v3621_v8 = vmul.f32 1.442695, %v3583_v17  ;;  %7174 = vmatmul.mubr.msk.f32.vlgmr.msra.gmra.mxu0 %vm3480_vm3, %v7374_v59  ;;  %v3679_v40 = vsel %vm3480_vm3, %v7374_v59, 0.0 }
 0x24a   : > { %7182 = vmatpush3.msra.mxu0 %v8163_v19  ;;  %v3504_v9 = vpop.xlane.xlu1 %3503  ;;  %3680 = vadd.xlane.f32.xlu0 %v3679_v40 }
 0x24b   : > { %7381 = vpow2.f32 %v3621_v8  ;;  %v3584_v16 = vsub.f32 %v8243_v3, %v3504_v9  ;;  %7183 = vmatprep.mubr.msk.f32.mxu0 %vm7560_vm1, %v8752_v41  ;;  %7191 = vmatprep.subr.mxu0 %v8752_v41 }
 0x24c   : > { %v7376_v63 = vpop.eup %7375 }
 0x24d   : > { %v3623_v61 = vmul.f32 1.442695, %v3584_v16  ;;  %7179 = vmatmul.mubr.msk.f32.vlgmr.msra.gmra.mxu1 %vm3480_vm3, %v7376_v63  ;;  %v3682_v43 = vsel %vm3480_vm3, %v7376_v63, 0.0 }
 0x24e   : > { %7187 = vmatpush3.msra.mxu1 %v8161_v18  ;;  %v3507_v1 = vpop.xlane.xlu0 %3506  ;;  %3683 = vadd.xlane.f32.xlu0 %v3682_v43 }
 0x24f   : > { %7383 = vpow2.f32 %v3623_v61  ;;  %v3585_v19 = vsub.f32 %v8249_v7, %v3507_v1  ;;  %7188 = vmatprep.mubr.msk.f32.mxu1 %vm7560_vm1, %v8752_v41  ;;  %7196 = vmatprep.subr.mxu1 %v8752_v41 }
 0x250   : > { %v7378_v3 = vpop.eup %7377 }
 0x251   : > { %v3625_v50 = vmul.f32 1.442695, %v3585_v19  ;;  %7184 = vmatmul.mubr.msk.f32.vlgmr.msra.gmra.mxu0 %vm3480_vm3, %v7378_v3  ;;  %v3685_v53 = vsel %vm3480_vm3, %v7378_v3, 0.0 }
 0x252   : > { %7192 = vmatpush3.msra.mxu0 %v8167_v21  ;;  %v3510_v38 = vpop.xlane.xlu1 %3509  ;;  %3686 = vadd.xlane.f32.xlu0 %v3685_v53 }
 0x253   : > { %7385 = vpow2.f32 %v3625_v50  ;;  %v3586_v18 = vsub.f32 %v8255_v11, %v3510_v38  ;;  %7193 = vmatprep.mubr.msk.f32.mxu0 %vm7560_vm1, %v8752_v41  ;;  %7201 = vmatprep.subr.mxu0 %v8752_v41 }
 0x254   : > { %v7380_v7 = vpop.eup %7379 }
 0x255   : > { %v3627_v54 = vmul.f32 1.442695, %v3586_v18  ;;  %7189 = vmatmul.mubr.msk.f32.vlgmr.msra.gmra.mxu1 %vm3480_vm3, %v7380_v7  ;;  %v3688_v36 = vsel %vm3480_vm3, %v7380_v7, 0.0 }
 0x256   : > { %7197 = vmatpush3.msra.mxu1 %v8165_v20  ;;  %v3513_v42 = vpop.xlane.xlu0 %3512  ;;  %3689 = vadd.xlane.f32.xlu0 %v3688_v36 }
 0x257   : > { %7387 = vpow2.f32 %v3627_v54  ;;  %v3587_v21 = vsub.f32 %v8261_v39, %v3513_v42  ;;  %7198 = vmatprep.mubr.msk.f32.mxu1 %vm7560_vm1, %v8752_v41  ;;  %7206 = vmatprep.subr.mxu1 %v8752_v41 }
 0x258   : > { %v7382_v11 = vpop.eup %7381 }
 0x259   : > { %v3629_v46 = vmul.f32 1.442695, %v3587_v21  ;;  %7194 = vmatmul.mubr.msk.f32.vlgmr.msra.gmra.mxu0 %vm3480_vm3, %v7382_v11  ;;  %v3691_v47 = vsel %vm3480_vm3, %v7382_v11, 0.0 }
 0x25a   : > { %7202 = vmatpush3.msra.mxu0 %v8171_v23  ;;  %v3516_v51 = vpop.xlane.xlu1 %3515  ;;  %3692 = vadd.xlane.f32.xlu0 %v3691_v47 }
 0x25b   : > { %7389 = vpow2.f32 %v3629_v46  ;;  %v3588_v20 = vsub.f32 %v8267_v49, %v3516_v51  ;;  %7203 = vmatprep.mubr.msk.f32.mxu0 %vm7560_vm1, %v8752_v41  ;;  %7211 = vmatprep.subr.mxu0 %v8752_v41 }
 0x25c   : > { %v7384_v39 = vpop.eup %7383 }
 0x25d   : > { %v3631_v55 = vmul.f32 1.442695, %v3588_v20  ;;  %7199 = vmatmul.mubr.msk.f32.vlgmr.msra.gmra.mxu1 %vm3480_vm3, %v7384_v39  ;;  %v3694_v17 = vsel %vm3480_vm3, %v7384_v39, 0.0 }
 0x25e   : > { %7207 = vmatpush3.msra.mxu1 %v8169_v22  ;;  %v3519_v59 = vpop.xlane.xlu0 %3518  ;;  %3695 = vadd.xlane.f32.xlu0 %v3694_v17 }
 0x25f   : > { %7391 = vpow2.f32 %v3631_v55  ;;  %v3589_v23 = vsub.f32 %v8273_v60, %v3519_v59  ;;  %7208 = vmatprep.mubr.msk.f32.mxu1 %vm7560_vm1, %v8752_v41  ;;  %7216 = vmatprep.subr.mxu1 %v8752_v41 }
 0x260   : > { %v8408_v49 = vpop.eup %7385 }
 0x261   : > { %v3633_v8 = vmul.f32 1.442695, %v3589_v23  ;;  %7204 = vmatmul.mubr.msk.f32.vlgmr.msra.gmra.mxu0 %vm3480_vm3, %v8408_v49 }
 0x262   : > { %7212 = vmatpush3.msra.mxu0 %v8175_v25  ;;  %v3522_v40 = vpop.xlane.xlu1 %3521  ;;  %7213 = vmatprep.mubr.msk.f32.mxu0 %vm7560_vm1, %v8752_v41 }
 0x263   : > { %7393 = vpow2.f32 %v3633_v8  ;;  %v3590_v22 = vsub.f32 %v8279_v5, %v3522_v40  ;;  %7221 = vmatprep.subr.mxu0 %v8752_v41 }
 0x264   : > { %v7388_v60 = vpop.eup %7387 }
 0x265   : > { %v3635_v9 = vmul.f32 1.442695, %v3590_v22  ;;  %7209 = vmatmul.mubr.msk.f32.vlgmr.msra.gmra.mxu1 %vm3480_vm3, %v7388_v60  ;;  %v3700_v16 = vsel %vm3480_vm3, %v7388_v60, 0.0 }
 0x266   : > { %7217 = vmatpush3.msra.mxu1 %v8173_v24  ;;  %v3525_v63 = vpop.xlane.xlu0 %3524  ;;  %3701 = vadd.xlane.f32.xlu1 %v3700_v16 }
 0x267   : > { %7395 = vpow2.f32 %v3635_v9  ;;  %v3591_v25 = vsub.f32 %v8285_v14, %v3525_v63  ;;  %7218 = vmatprep.mubr.msk.f32.mxu1 %vm7560_vm1, %v8752_v41  ;;  %7226 = vmatprep.subr.mxu1 %v8752_v41 }
 0x268   : > { %v7390_v5 = vpop.eup %7389 }
 0x269   : > { %v3637_v61 = vmul.f32 1.442695, %v3591_v25  ;;  %7214 = vmatmul.mubr.msk.f32.vlgmr.msra.gmra.mxu0 %vm3480_vm3, %v7390_v5  ;;  %v3703_v43 = vsel %vm3480_vm3, %v7390_v5, 0.0 }
 0x26a   : > { %7222 = vmatpush3.msra.mxu0 %v8179_v27  ;;  %v3528_v1 = vpop.xlane.xlu1 %3527  ;;  %3704 = vadd.xlane.f32.xlu1 %v3703_v43  ;;  %v3531_v24 = vpop.xlane.xlu0 %3530 }
 0x26b   : > { %7397 = vpow2.f32 %v3637_v61  ;;  %v3592_v19 = vsub.f32 %v8293_v56, %v3528_v1  ;;  %v3593_v14 = vsub.f32 %v8253_v10, %v3531_v24  ;;  %7223 = vmatprep.mubr.msk.f32.mxu0 %vm7560_vm1, %v8752_v41  ;;  %7231 = vmatprep.subr.mxu0 %v8752_v41  ;;  %v8753_v24 = vld [vmem:[#allocation14_spill] sm:$0xff] }
 0x26c   : > { %v7392_v3 = vpop.eup %7391 }
 0x26d   : > { %v3639_v50 = vmul.f32 1.442695, %v3592_v19  ;;  %v3641_v53 = vmul.f32 1.442695, %v3593_v14  ;;  %7219 = vmatmul.mubr.msk.f32.vlgmr.msra.gmra.mxu1 %vm3480_vm3, %v7392_v3  ;;  %v3706_v27 = vsel %vm3480_vm3, %v7392_v3, 0.0 }
 0x26e   : > { %7227 = vmatpush3.msra.mxu1 %v8177_v26  ;;  %v3534_v38 = vpop.xlane.xlu1 %3533  ;;  %3707 = vadd.xlane.f32.xlu1 %v3706_v27  ;;  %v3537_v18 = vpop.xlane.xlu0 %3536  ;;  %v8755_v27 = vld [vmem:[#allocation15_spill] sm:$0xff] }
 0x26f   : > { %7399 = vpow2.f32 %v3639_v50  ;;  %v3594_v10 = vsub.f32 %v8301_v12, %v3534_v38  ;;  %v3595_v56 = vsub.f32 %v8259_v15, %v3537_v18  ;;  %7228 = vmatprep.mubr.msk.f32.mxu1 %vm7560_vm1, %v8752_v41  ;;  %7236 = vmatprep.subr.mxu1 %v8752_v41 }
 0x270   : > { %v7394_v7 = vpop.eup %7393  ;;  %7401 = vpow2.f32 %v3641_v53 }
 0x271   : > { %v3643_v54 = vmul.f32 1.442695, %v3594_v10  ;;  %v3645_v36 = vmul.f32 1.442695, %v3595_v56  ;;  %7224 = vmatmul.mubr.msk.f32.vlgmr.msra.gmra.mxu0 %vm3480_vm3, %v7394_v7  ;;  %v3709_v26 = vsel %vm3480_vm3, %v7394_v7, 0.0  ;;  %v8756_v10 = vld [vmem:[#allocation7_spill] sm:$0xff] }
 0x272   : > { %7232 = vmatpush3.msra.mxu0 %v8183_v29  ;;  %v3540_v42 = vpop.xlane.xlu1 %3539  ;;  %3710 = vadd.xlane.f32.xlu1 %v3709_v26  ;;  %v3543_v12 = vpop.xlane.xlu0 %3542  ;;  %v8758_v26 = vld [vmem:[#allocation9_spill] sm:$0xff] }
 0x273   : > { %7403 = vpow2.f32 %v3643_v54  ;;  %v3596_v15 = vsub.f32 %v8307_v0, %v3540_v42  ;;  %v3597_v21 = vsub.f32 %v8265_v48, %v3543_v12  ;;  %7233 = vmatprep.mubr.msk.f32.mxu0 %vm7560_vm1, %v8752_v41  ;;  %7241 = vmatprep.subr.mxu0 %v8752_v41 }
 0x274   : > { %v8448_v11 = vpop.eup %7395  ;;  %7405 = vpow2.f32 %v3645_v36  ;;  %v8757_v36 = vld [vmem:[#allocation6_spill] sm:$0xff] }
 0x275   : > { %v3647_v46 = vmul.f32 1.442695, %v3596_v15  ;;  %v3649_v47 = vmul.f32 1.442695, %v3597_v21  ;;  %7229 = vmatmul.mubr.msk.f32.vlgmr.msra.gmra.mxu1 %vm3480_vm3, %v8448_v11  ;;  %v8759_v21 = vld [vmem:[#allocation8_spill] sm:$0xff] }
 0x276   : > { %7237 = vmatpush3.msra.mxu1 %v8181_v28  ;;  %v3546_v29 = vpop.xlane.xlu1 %3545  ;;  %v3549_v51 = vpop.xlane.xlu0 %3548  ;;  %7238 = vmatprep.mubr.msk.f32.mxu1 %vm7560_vm1, %v8752_v41 }
 0x277   : > { %7407 = vpow2.f32 %v3647_v46  ;;  %v3598_v48 = vsub.f32 %v8313_v44, %v3546_v29  ;;  %v3599_v0 = vsub.f32 %v8271_v57, %v3549_v51  ;;  %7246 = vmatprep.subr.mxu1 %v8752_v41 }
 0x278   : > { %v8458_v20 = vpop.eup %7397  ;;  %7409 = vpow2.f32 %v3649_v47  ;;  %v8760_v47 = vld [vmem:[#allocation11_spill] sm:$0xff] }
 0x279   : > { %v3651_v39 = vmul.f32 1.442695, %v3598_v48  ;;  %v3653_v55 = vmul.f32 1.442695, %v3599_v0  ;;  %7234 = vmatmul.mubr.msk.f32.vlgmr.msra.gmra.mxu0 %vm3480_vm3, %v8458_v20  ;;  %v8761_v0 = vld [vmem:[#allocation10_spill] sm:$0xff] }
 0x27a   : > { %7242 = vmatpush3.msra.mxu0 %v8187_v31  ;;  %v3552_v28 = vpop.xlane.xlu1 %3551  ;;  %v3555_v17 = vpop.xlane.xlu0 %3554  ;;  %7243 = vmatprep.mubr.msk.f32.mxu0 %vm7560_vm1, %v8752_v41 }
 0x27b   : > { %7411 = vpow2.f32 %v3651_v39  ;;  %v3600_v44 = vsub.f32 %v8319_v2, %v3552_v28  ;;  %v3601_v57 = vsub.f32 %v8277_v4, %v3555_v17  ;;  %7251 = vmatprep.subr.mxu0 %v8752_v41  ;;  %v3712_v39 = vsel %vm3480_vm3, %v8448_v11, 0.0  ;;  %v8762_v28 = vld [vmem:[#allocation13_spill] sm:$0xff] }
 0x27c   : > { %v8468_v59 = vpop.eup %7399  ;;  %7413 = vpow2.f32 %v3653_v55 }
 0x27d   : > { %v8470_v23 = vpop.eup %7401  ;;  %v3655_v8 = vmul.f32 1.442695, %v3600_v44  ;;  %v3657_v40 = vmul.f32 1.442695, %v3601_v57  ;;  %7239 = vmatmul.mubr.msk.f32.vlgmr.msra.gmra.mxu1 %vm3480_vm3, %v8468_v59  ;;  %v8763_v57 = vld [vmem:[#allocation12_spill] sm:$0xff] }
 0x27e   : > { %7244 = vmatmul.mubr.msk.f32.vlgmr.msra.gmra.mxu0 %vm3480_vm3, %v8470_v23  ;;  %7247 = vmatpush3.msra.mxu1 %v8185_v30  ;;  %v3558_v31 = vpop.xlane.xlu1 %3557  ;;  %v3561_v2 = vpop.xlane.xlu0 %3560 }
 0x27f   : > { %7415 = vpow2.f32 %v3655_v8  ;;  %7252 = vmatpush3.msra.mxu0 %v8191_v33  ;;  %v3602_v4 = vsub.f32 %v8325_v6, %v3558_v31  ;;  %v3603_v22 = vsub.f32 %v8283_v13, %v3561_v2  ;;  %7248 = vmatprep.mubr.msk.f32.mxu1 %vm7560_vm1, %v8752_v41  ;;  %v3673_v31 = vsel %vm3480_vm3, %v8350_v45, 0.0 }
 0x280   : > { %v8482_v60 = vpop.eup %7403  ;;  %7417 = vpow2.f32 %v3657_v40  ;;  %7253 = vmatprep.mubr.msk.f32.mxu0 %vm7560_vm1, %v8752_v41  ;;  %7256 = vmatprep.subr.mxu1 %v8752_v41  ;;  %v3715_v40 = vsel %vm3480_vm3, %v8458_v20, 0.0 }
 0x281   : > { %v7406_v30 = vpop.eup %7405  ;;  %v3659_v9 = vmul.f32 1.442695, %v3602_v4  ;;  %v3661_v16 = vmul.f32 1.442695, %v3603_v22  ;;  %7261 = vmatprep.subr.mxu0 %v8752_v41  ;;  %7249 = vmatmul.mubr.msk.f32.vlgmr.msra.gmra.mxu1 %vm3480_vm3, %v8482_v60  ;;  %v3724_v42 = vsel %vm3480_vm3, %v8482_v60, 0.0  ;;  %v3721_v4 = vsel %vm3480_vm3, %v8470_v23, 0.0 }
 0x282   : > { %7254 = vmatmul.mubr.msk.f32.vlgmr.msra.gmra.mxu0 %vm3480_vm3, %v7406_v30  ;;  %7257 = vmatpush3.msra.mxu1 %v8189_v32  ;;  %v3564_v33 = vpop.xlane.xlu1 %3563  ;;  %v3567_v6 = vpop.xlane.xlu0 %3566  ;;  %v3727_v13 = vsel %vm3480_vm3, %v7406_v30, 0.0  ;;  %v3697_v22 = vsel %vm3480_vm3, %v8408_v49, 0.0 }
 0x283   : > { %7419 = vpow2.f32 %v3659_v9  ;;  %7262 = vmatpush3.msra.mxu0 %v8195_v35  ;;  %v3604_v63 = vsub.f32 %v8331_v58, %v3564_v33  ;;  %v3605_v25 = vsub.f32 %v8289_v52, %v3567_v6  ;;  %3728 = vadd.xlane.f32.xlu0 %v3727_v13 }
 0x284   : > { %v8496_v5 = vpop.eup %7407  ;;  %7421 = vpow2.f32 %v3661_v16  ;;  %7258 = vmatprep.mubr.msk.f32.mxu1 %vm7560_vm1, %v8752_v41  ;;  %7263 = vmatprep.mubr.msk.f32.mxu0 %vm7560_vm1, %v8752_v41 }
 0x285   : > { %v7410_v32 = vpop.eup %7409  ;;  %v3663_v61 = vmul.f32 1.442695, %v3604_v63  ;;  %v3665_v43 = vmul.f32 1.442695, %v3605_v25  ;;  %7266 = vmatprep.subr.mxu1 %v8752_v41  ;;  %7271 = vmatprep.subr.mxu0 %v8752_v41  ;;  %v3730_v29 = vsel %vm3480_vm3, %v8496_v5, 0.0 }
 0x286   : > { %7259 = vmatmul.mubr.msk.f32.vlgmr.msra.gmra.mxu1 %vm3480_vm3, %v8496_v5  ;;  %7264 = vmatmul.mubr.msk.f32.vlgmr.msra.gmra.mxu0 %vm3480_vm3, %v7410_v32  ;;  %v3570_v35 = vpop.xlane.xlu1 %3569  ;;  %v3733_v58 = vsel %vm3480_vm3, %v7410_v32, 0.0  ;;  %v3573_v52 = vpop.xlane.xlu0 %3572 }
 0x287   : > { %7267 = vmatpush3.msra.mxu1 %v8193_v34  ;;  %7272 = vmatpush3.msra.mxu0 %v8199_v37  ;;  %v3606_v1 = vsub.f32 %v8337_v62, %v3570_v35  ;;  %v3607_v19 = vsub.f32 %v8753_v24, %v3573_v52  ;;  %7423 = vpow2.f32 %v3663_v61  ;;  %v8754_v62 = vld [vmem:[#allocation5_spill] sm:$0xff] }
 0x288   : > { %v8512_v14 = vpop.eup %7411  ;;  %3734 = vadd.xlane.f32.xlu0 %v3733_v58  ;;  %7268 = vmatprep.mubr.msk.f32.mxu1 %vm7560_vm1, %v8752_v41  ;;  %7425 = vpow2.f32 %v3665_v43 }
 0x289   : > { %v7414_v3 = vpop.eup %7413  ;;  %v3667_v50 = vmul.f32 1.442695, %v3606_v1  ;;  %v3669_v53 = vmul.f32 1.442695, %v3607_v19  ;;  %7273 = vmatprep.mubr.msk.f32.mxu0 %vm7560_vm1, %v8752_v41  ;;  %7276 = vmatprep.subr.mxu1 %v8752_v41  ;;  %v3736_v17 = vsel %vm3480_vm3, %v8512_v14, 0.0 }
 0x28a   : > { %7281 = vmatprep.subr.mxu0 %v8752_v41  ;;  %7269 = vmatmul.mubr.msk.f32.vlgmr.msra.gmra.mxu1 %vm3480_vm3, %v8512_v14  ;;  %v3576_v34 = vpop.xlane.xlu1 %3575  ;;  %v3739_v37 = vsel %vm3480_vm3, %v7414_v3, 0.0 }
 0x28b   : > { %7274 = vmatmul.mubr.msk.f32.vlgmr.msra.gmra.mxu0 %vm3480_vm3, %v7414_v3  ;;  %7277 = vmatpush3.msra.mxu1 %v8754_v62  ;;  %v3608_v38 = vsub.f32 %v8755_v27, %v3576_v34  ;;  %7427 = vpow2.f32 %v3667_v50 }
 0x28c   : > { %v7416_v18 = vpop.eup %7415  ;;  %7282 = vmatpush3.msra.mxu0 %v8756_v10  ;;  %3740 = vadd.xlane.f32.xlu0 %v3739_v37  ;;  %7429 = vpow2.f32 %v3669_v53 }
 0x28d   : > { %v8527_v56 = vpop.eup %7417  ;;  %v3671_v7 = vmul.f32 1.442695, %v3608_v38  ;;  %7278 = vmatprep.mubr.msk.f32.mxu1 %vm7560_vm1, %v8752_v41  ;;  %7283 = vmatprep.mubr.msk.f32.mxu0 %vm7560_vm1, %v8752_v41  ;;  %v3742_v8 = vsel %vm3480_vm3, %v7416_v18, 0.0 }
 0x28e   : > { %7286 = vmatprep.subr.mxu1 %v8752_v41  ;;  %7291 = vmatprep.subr.mxu0 %v8752_v41  ;;  %v3745_v20 = vsel %vm3480_vm3, %v8527_v56, 0.0 }
 0x28f   : > { %7279 = vmatmul.mubr.msk.f32.vlgmr.msra.gmra.mxu1 %vm3480_vm3, %v7416_v18  ;;  %7284 = vmatmul.mubr.msk.f32.vlgmr.msra.gmra.mxu0 %vm3480_vm3, %v8527_v56  ;;  %7431 = vpow2.f32 %v3671_v7 }
 0x290   : > { %v7420_v54 = vpop.eup %7419  ;;  %7287 = vmatpush3.msra.mxu1 %v8757_v36  ;;  %7292 = vmatpush3.msra.mxu0 %v8758_v26 }
 0x291   : > { %v7422_v12 = vpop.eup %7421  ;;  %3725 = vadd.xlane.f32.xlu0 %v3724_v42  ;;  %7288 = vmatprep.mubr.msk.f32.mxu1 %vm7560_vm1, %v8752_v41  ;;  %v3748_v45 = vsel %vm3480_vm3, %v7420_v54, 0.0 }
 0x292   : > { %7293 = vmatprep.mubr.msk.f32.mxu0 %vm7560_vm1, %v8752_v41  ;;  %7296 = vmatprep.subr.mxu1 %v8752_v41  ;;  %v3751_v15 = vsel %vm3480_vm3, %v7422_v12, 0.0 }
 0x293   : > { %7301 = vmatprep.subr.mxu0 %v8752_v41  ;;  %7289 = vmatmul.mubr.msk.f32.vlgmr.msra.gmra.mxu1 %vm3480_vm3, %v7420_v54 }
 0x294   : > { %7294 = vmatmul.mubr.msk.f32.vlgmr.msra.gmra.mxu0 %vm3480_vm3, %v7422_v12  ;;  %7297 = vmatpush3.msra.mxu1 %v8759_v21  ;;  %v7424_v46 = vpop.eup %7423 }
 0x295   : > { %7302 = vmatpush3.msra.mxu0 %v8760_v47  ;;  %3752 = vadd.xlane.f32.xlu1 %v3751_v15  ;;  %v7426_v51 = vpop.eup %7425  ;;  %v3754_v60 = vsel %vm3480_vm3, %v7424_v46, 0.0 }
 0x296   : > { %3731 = vadd.xlane.f32.xlu0 %v3730_v29  ;;  %7298 = vmatprep.mubr.msk.f32.mxu1 %vm7560_vm1, %v8752_v41  ;;  %v3757_v11 = vsel %vm3480_vm3, %v7426_v51, 0.0 }
 0x297   : > { %7303 = vmatprep.mubr.msk.f32.mxu0 %vm7560_vm1, %v8752_v41  ;;  %7306 = vmatprep.subr.mxu1 %v8752_v41 }
 0x298   : > { %7311 = vmatprep.subr.mxu0 %v8752_v41  ;;  %7299 = vmatmul.mubr.msk.f32.vlgmr.msra.gmra.mxu1 %vm3480_vm3, %v7424_v46  ;;  %v7428_v48 = vpop.eup %7427 }
 0x299   : > { %7304 = vmatmul.mubr.msk.f32.vlgmr.msra.gmra.mxu0 %vm3480_vm3, %v7426_v51  ;;  %7307 = vmatpush3.msra.mxu1 %v8761_v0  ;;  %v7430_v55 = vpop.eup %7429  ;;  %v3760_v23 = vsel %vm3480_vm3, %v7428_v48, 0.0 }
 0x29a   : > { %7312 = vmatpush3.msra.mxu0 %v8762_v28  ;;  %3713 = vadd.xlane.f32.xlu1 %v3712_v39  ;;  %v3763_v2 = vsel %vm3480_vm3, %v7430_v55, 0.0 }
 0x29b   : > { %3737 = vadd.xlane.f32.xlu0 %v3736_v17  ;;  %7308 = vmatprep.mubr.msk.f32.mxu1 %vm7560_vm1, %v8752_v41 }
 0x29c   : > { %7313 = vmatprep.mubr.msk.f32.mxu0 %vm7560_vm1, %v8752_v41  ;;  %7316 = vmatprep.subr.mxu1 %v8752_v41  ;;  %v7432_v44 = vpop.eup %7431 }
 0x29d   : > { %7309 = vmatmul.mubr.msk.f32.vlgmr.msra.gmra.mxu1 %vm3480_vm3, %v7428_v48  ;;  %7314 = vmatmul.mubr.msk.f32.vlgmr.msra.gmra.mxu0 %vm3480_vm3, %v7430_v55 }
 0x29e   : > { %7317 = vmatpush3.msra.mxu1 %v8763_v57  ;;  %3758 = vadd.xlane.f32.xlu1 %v3757_v11 }
 0x29f   : > { %3743 = vadd.xlane.f32.xlu0 %v3742_v8  ;;  %7318 = vmatprep.mubr.msk.f32.mxu1 %vm7560_vm1, %v8752_v41  ;;  %v3718_v41 = vsel %vm3480_vm3, %v8468_v59, 0.0  ;;  %v3766_v59 = vsel %vm3480_vm3, %v7432_v44, 0.0 }
 0x2a1   : > { %7319 = vmatmul.mubr.msk.f32.vlgmr.msra.gmra.mxu1 %vm3480_vm3, %v7432_v44 }
 0x2a2   : > { %3716 = vadd.xlane.f32.xlu1 %v3715_v40 }
 0x2a3   : > { %3674 = vadd.xlane.f32.xlu0 %v3673_v31 }
 0x2a6   : > { %3764 = vadd.xlane.f32.xlu1 %v3763_v2 }
 0x2a7   : > { %3722 = vadd.xlane.f32.xlu0 %v3721_v4 }
 0x2aa   : > { %3719 = vadd.xlane.f32.xlu1 %v3718_v41 }
 0x2ae   : > { %3698 = vadd.xlane.f32.xlu1 %v3697_v22 }
 0x2b2   : > { %3746 = vadd.xlane.f32.xlu1 %v3745_v20 }
 0x2b6   : > { %3749 = vadd.xlane.f32.xlu1 %v3748_v45 }
 0x2ba   : > { %3755 = vadd.xlane.f32.xlu1 %v3754_v60 }
 0x2be   : > { %3761 = vadd.xlane.f32.xlu1 %v3760_v23 }
 0x2c2   : > { %3767 = vadd.xlane.f32.xlu1 %v3766_v59 }
 0x2cf   : > { %v3678_v30 = vpop.xlane.xlu0 %3677 }
 0x2d0   : > { %7433 = vrcp.f32 %v3678_v30 }
 0x2d3   : > { %v3681_v9 = vpop.xlane.xlu0 %3680 }
 0x2d4   : > { %7435 = vrcp.f32 %v3681_v9 }
 0x2d7   : > { %v3684_v49 = vpop.xlane.xlu0 %3683 }
 0x2d8   : > { %7437 = vrcp.f32 %v3684_v49 }
 0x2db   : > { %v3687_v16 = vpop.xlane.xlu0 %3686 }
 0x2dc   : > { %7439 = vrcp.f32 %v3687_v16 }
 0x2dd   : > { %v7434_v63 = vpop.eup %7433 }
 0x2df   : > { %v3690_v33 = vpop.xlane.xlu0 %3689 }
 0x2e0   : > { %7441 = vrcp.f32 %v3690_v33 }
 0x2e1   : > { %v7436_v35 = vpop.eup %7435 }
 0x2e3   : > { %v3693_v32 = vpop.xlane.xlu0 %3692 }
 0x2e4   : > { %7443 = vrcp.f32 %v3693_v32 }
 0x2e5   : > { %v7438_v24 = vpop.eup %7437 }
 0x2e7   : > { %v3696_v19 = vpop.xlane.xlu0 %3695 }
 0x2e8   : > { %7445 = vrcp.f32 %v3696_v19 }
 0x2e9   : > { %v7440_v34 = vpop.eup %7439 }
 0x2ed   : > { %v7442_v18 = vpop.eup %7441 }
 0x2ef   : > { %v3702_v43 = vpop.xlane.xlu1 %3701 }
 0x2f0   : > { %7447 = vrcp.f32 %v3702_v43 }
 0x2f1   : > { %v7444_v54 = vpop.eup %7443 }
 0x2f3   : > { %v3705_v3 = vpop.xlane.xlu1 %3704 }
 0x2f4   : > { %7449 = vrcp.f32 %v3705_v3 }
 0x2f5   : > { %v7446_v15 = vpop.eup %7445 }
 0x2f7   : > { %v3708_v38 = vpop.xlane.xlu1 %3707 }
 0x2f8   : > { %7451 = vrcp.f32 %v3708_v38 }
 0x2fb   : > { %v3711_v26 = vpop.xlane.xlu1 %3710 }
 0x2fc   : > { %7453 = vrcp.f32 %v3711_v26 }
 0x2fd   : > { %v7448_v28 = vpop.eup %7447 }
 0x301   : > { %v8599_v6 = vpop.f32.mrf.mxu0  ;;  %v7450_v8 = vpop.eup %7449 }
 0x303   : > { %v7165_v13 = vpop.f32.mrf.mxu0 }
 0x305   : > { %v3911_v25 = vpop.f32.mrf.mxu1  ;;  %v7452_v22 = vpop.eup %7451 }
 0x306   : > { %v6138_v5 = vmul.f32 %v7434_v63, %v3911_v25 }
 0x307   : > { %v7170_v61 = vpop.f32.mrf.mxu1 }
 0x308   : > { %6170 = vrot.lane.b32.xlu0 %v6138_v5, %s7561_s13 }
 0x309   : > { %v3984_v58 = vpop.f32.mrf.mxu0  ;;  %v7454_v30 = vpop.eup %7453 }
 0x30a   : > { %v6139_v52 = vmul.f32 %v7436_v35, %v3984_v58 }
 0x30b   : > { %v7175_v1 = vpop.f32.mrf.mxu0 }
 0x30c   : > { %6174 = vrot.lane.b32.xlu0 %v6139_v52, %s7562_s14  ;;  %v3729_v46 = vpop.xlane.xlu0 %3728 }
 0x30d   : > { %v4057_v14 = vpop.f32.mrf.mxu1 }
 0x30e   : > { %v6140_v50 = vmul.f32 %v7438_v24, %v4057_v14 }
 0x30f   : > { %v7180_v53 = vpop.f32.mrf.mxu1 }
 0x310   : > { %6178 = vrot.lane.b32.xlu0 %v6140_v50, %s7563_s20 }
 0x311   : > { %v4130_v37 = vpop.f32.mrf.mxu0  ;;  %v3735_v55 = vpop.xlane.xlu0 %3734 }
 0x312   : > { %v6141_v62 = vmul.f32 %v7440_v34, %v4130_v37 }
 0x313   : > { %v7185_v27 = vpop.f32.mrf.mxu0 }
 0x314   : > { %6182 = vrot.lane.b32.xlu0 %v6141_v62, %s7564_s22 }
 0x315   : > { %v4203_v10 = vpop.f32.mrf.mxu1  ;;  %v3741_v31 = vpop.xlane.xlu0 %3740 }
 0x316   : > { %v6142_v56 = vmul.f32 %v7442_v18, %v4203_v10 }
 0x317   : > { %v7190_v7 = vpop.f32.mrf.mxu1 }
 0x318   : > { %6186 = vrot.lane.b32.xlu0 %v6142_v56, %s7565_s23 }
 0x319   : > { %v4276_v36 = vpop.f32.mrf.mxu0 }
 0x31a   : > { %v6143_v42 = vmul.f32 %v7444_v54, %v4276_v36  ;;  %v3726_v59 = vpop.xlane.xlu0 %3725 }
 0x31b   : > { %v7195_v12 = vpop.f32.mrf.mxu0 }
 0x31c   : > { %6190 = vrot.lane.b32.xlu0 %v6143_v42, %s7566_s27 }
 0x31d   : > { %v4349_v21 = vpop.f32.mrf.mxu1 }
 0x31e   : > { %v8607_v47 = vpop.xlane.xlu1 %3752  ;;  %v6144_v29 = vmul.f32 %v7446_v15, %v4349_v21 }
 0x31f   : > { %v7200_v51 = vpop.f32.mrf.mxu1  ;;  %v3732_v25 = vpop.xlane.xlu0 %3731 }
 0x320   : > { %6194 = vrot.lane.b32.xlu0 %v6144_v29, %s7567_s28 }
 0x321   : > { %v8610_v48 = vpop.f32.mrf.mxu0 }
 0x323   : > { %v3714_v0 = vpop.xlane.xlu1 %3713  ;;  %v7205_v39 = vpop.f32.mrf.mxu0 }
 0x324   : > { %7455 = vrcp.f32 %v3714_v0  ;;  %v3738_v19 = vpop.xlane.xlu0 %3737 }
 0x325   : > { %v4495_v17 = vpop.f32.mrf.mxu1 }
 0x326   : > { %v6146_v11 = vmul.f32 %v7448_v28, %v4495_v17 }
 0x327   : > { %v8612_v44 = vpop.xlane.xlu1 %3758  ;;  %v7210_v57 = vpop.f32.mrf.mxu1 }
 0x328   : > { %6198 = vrot.lane.b32.xlu1 %v6146_v11, %s7561_s13  ;;  %v3744_v26 = vpop.xlane.xlu0 %3743 }
 0x329   : > { %v4568_v40 = vpop.f32.mrf.mxu0 }
 0x32a   : > { %v6147_v2 = vmul.f32 %v7450_v8, %v4568_v40 }
 0x32b   : > { %v3717_v4 = vpop.xlane.xlu1 %3716  ;;  %v7215_v41 = vpop.f32.mrf.mxu0 }
 0x32c   : > { %7457 = vrcp.f32 %v3717_v4  ;;  %6202 = vrot.lane.b32.xlu1 %v6147_v2, %s7562_s14 }
 0x32d   : > { %v4641_v20 = vpop.f32.mrf.mxu1 }
 0x32e   : > { %v6148_v45 = vmul.f32 %v7452_v22, %v4641_v20 }
 0x32f   : > { %v8616_v60 = vpop.xlane.xlu1 %3764  ;;  %v7220_v23 = vpop.f32.mrf.mxu1 }
 0x330   : > { %6206 = vrot.lane.b32.xlu1 %v6148_v45, %s7563_s20 }
 0x331   : > { %v4714_v9 = vpop.f32.mrf.mxu0  ;;  %v7456_v13 = vpop.eup %7455 }
 0x332   : > { %v6149_v49 = vmul.f32 %v7454_v30, %v4714_v9 }
 0x333   : > { %v3720_v16 = vpop.xlane.xlu1 %3719  ;;  %v7225_v33 = vpop.f32.mrf.mxu0 }
 0x334   : > { %7459 = vrcp.f32 %v3720_v16  ;;  %6210 = vrot.lane.b32.xlu1 %v6149_v49, %s7564_s22 }
 0x335   : > { %7461 = vrcp.f32 %v3729_v46  ;;  %v4787_v63 = vpop.f32.mrf.mxu1 }
 0x336   : > { %7463 = vrcp.f32 %v3726_v59  ;;  %v6150_v5 = vmul.f32 %v7456_v13, %v4787_v63 }
 0x337   : > { %v3699_v32 = vpop.xlane.xlu1 %3698  ;;  %v7230_v61 = vpop.f32.mrf.mxu1 }
 0x338   : > { %7465 = vrcp.f32 %v3699_v32  ;;  %6214 = vrot.lane.b32.xlu1 %v6150_v5, %s7565_s23 }
 0x339   : > { %v7458_v43 = vpop.eup %7457  ;;  %7467 = vrcp.f32 %v3732_v25  ;;  %v4860_v35 = vpop.f32.mrf.mxu0 }
 0x33a   : > { %v6151_v58 = vmul.f32 %v7458_v43, %v4860_v35  ;;  %7469 = vrcp.f32 %v3735_v55 }
 0x33b   : > { %v7235_v52 = vpop.f32.mrf.mxu0  ;;  %v3747_v1 = vpop.xlane.xlu1 %3746  ;;  %7471 = vrcp.f32 %v3738_v19 }
 0x33c   : > { %6218 = vrot.lane.b32.xlu1 %v6151_v58, %s7566_s27  ;;  %7473 = vrcp.f32 %v3747_v1 }
 0x33d   : > { %v4933_v24 = vpop.f32.mrf.mxu1  ;;  %7475 = vrcp.f32 %v3741_v31 }
 0x33e   : > { %v8622_v14 = vpop.f32.mrf.mxu0 }
 0x33f   : > { %v7240_v3 = vpop.f32.mrf.mxu1  ;;  %v3750_v18 = vpop.xlane.xlu1 %3749 }
 0x340   : > { %v7245_v50 = vpop.f32.mrf.mxu0  ;;  %7477 = vrcp.f32 %v3750_v18 }
 0x341   : > { %v7460_v53 = vpop.eup %7459  ;;  %v5079_v34 = vpop.f32.mrf.mxu1  ;;  %7479 = vrcp.f32 %v3744_v26 }
 0x342   : > { %v7462_v37 = vpop.eup %7461  ;;  %v6152_v62 = vmul.f32 %v7460_v53, %v4933_v24  ;;  %v5152_v27 = vpop.f32.mrf.mxu0  ;;  %7481 = vrcp.f32 %v8607_v47 }
 0x343   : > { %v7464_v38 = vpop.eup %7463  ;;  %v6155_v10 = vmul.f32 %v7462_v37, %v5152_v27  ;;  %v7250_v56 = vpop.f32.mrf.mxu1 }
 0x344   : > { %6222 = vrot.lane.b32.xlu1 %v6152_v62, %s7567_s28  ;;  %v6154_v7 = vmul.f32 %v7464_v38, %v5079_v34  ;;  %v7255_v54 = vpop.f32.mrf.mxu0  ;;  %v3756_v55 = vpop.xlane.xlu1 %3755 }
 0x345   : > { %v7466_v36 = vpop.eup %7465  ;;  %6249 = vrot.lane.b32.xlu0 %v6155_v10, %s7562_s14  ;;  %7483 = vrcp.f32 %v3756_v55  ;;  %v3675_v10 = vpop.xlane.xlu0 %3674 }
 0x346   : > { %v7468_v42 = vpop.eup %7467  ;;  %v5225_v12 = vpop.f32.mrf.mxu1  ;;  %v8627_v21 = vmul.f32 %v7466_v36, %v8610_v48  ;;  %7485 = vrcp.f32 %v8612_v44 }
 0x347   : > { %v5298_v15 = vpop.f32.mrf.mxu0  ;;  %v6156_v46 = vmul.f32 %v7468_v42, %v5225_v12  ;;  %v7470_v0 = vpop.eup %7469 }
 0x348   : > { %6245 = vrot.lane.b32.xlu1 %v6154_v7, %s7561_s13  ;;  %v7260_v29 = vpop.f32.mrf.mxu1  ;;  %v6157_v28 = vmul.f32 %v7470_v0, %v5298_v15  ;;  %v7472_v48 = vpop.eup %7471 }
 0x349   : > { %v7265_v51 = vpop.f32.mrf.mxu0  ;;  %6253 = vrot.lane.b32.xlu0 %v6156_v46, %s7563_s20  ;;  %v7474_v8 = vpop.eup %7473 }
 0x34a   : > { %v5371_v39 = vpop.f32.mrf.mxu1  ;;  %v7476_v47 = vpop.eup %7475 }
 0x34b   : > { %v5444_v17 = vpop.f32.mrf.mxu0  ;;  %v6158_v40 = vmul.f32 %v7472_v48, %v5371_v39  ;;  %v3762_v45 = vpop.xlane.xlu1 %3761 }
 0x34c   : > { %v7270_v11 = vpop.f32.mrf.mxu1  ;;  %v6159_v23 = vmul.f32 %v7476_v47, %v5444_v17  ;;  %7487 = vrcp.f32 %v3762_v45  ;;  %v3723_v56 = vpop.xlane.xlu0 %3722 }
 0x34d   : > { %v7275_v57 = vpop.f32.mrf.mxu0  ;;  %6257 = vrot.lane.b32.xlu0 %v6157_v28, %s7564_s22  ;;  %v7478_v20 = vpop.eup %7477  ;;  %7489 = vrcp.f32 %v8616_v60 }
 0x34e   : > { %v7480_v16 = vpop.eup %7479 }
 0x34f   : > { %v5517_v31 = vpop.f32.mrf.mxu1  ;;  %v5590_v2 = vpop.f32.mrf.mxu0 }
 0x350   : > { %v8633_v4 = vmul.f32 %v7474_v8, %v5590_v2  ;;  %v7482_v13 = vpop.eup %7481  ;;  %v6160_v63 = vmul.f32 %v7480_v16, %v5517_v31  ;;  %v3768_v43 = vpop.xlane.xlu1 %3767 }
 0x351   : > { %v7280_v41 = vpop.f32.mrf.mxu1  ;;  %v7285_v22 = vpop.f32.mrf.mxu0  ;;  %6261 = vrot.lane.b32.xlu0 %v6158_v40, %s7565_s23  ;;  %7491 = vrcp.f32 %v3768_v43 }
 0x352   : > { %v7484_v61 = vpop.eup %7483  ;;  %7493 = vrcp.f32 %v3675_v10 }
 0x353   : > { %v5663_v59 = vpop.f32.mrf.mxu1  ;;  %v7486_v24 = vpop.eup %7485  ;;  %7495 = vrcp.f32 %v3723_v56 }
 0x354   : > { %v6162_v30 = vmul.f32 %v7478_v20, %v5663_v59  ;;  %v5736_v9 = vpop.f32.mrf.mxu0 }
 0x355   : > { %v7290_v49 = vpop.f32.mrf.mxu1  ;;  %6265 = vrot.lane.b32.xlu0 %v6159_v23, %s7566_s27  ;;  %v6163_v25 = vmul.f32 %v7482_v13, %v5736_v9 }
 0x356   : > { %v7295_v33 = vpop.f32.mrf.mxu0  ;;  %6273 = vrot.lane.b32.xlu1 %v6162_v30, %s7561_s13  ;;  %s7501_s13 = sshll.u32 %s7568_s12, 4  ;;  %s7502_s13 = int_to_ptr.vmem [resolvable:$false] %s7501_s13 }
 0x357   : > { %p7504_p0 = scmp.lt.s32.totalorder %s6334_s7, %s7502_s13 }
 0x358   : > { %v5809_v5 = vpop.f32.mrf.mxu1 }
 0x359   : > { %v5882_v32 = vpop.f32.mrf.mxu0  ;;  %6269 = vrot.lane.b32.xlu0 %v6160_v63, %s7567_s28  ;;  %v6164_v58 = vmul.f32 %v7484_v61, %v5809_v5  ;;  %v7488_v60 = vpop.eup %7487 }
 0x35a   : > { %v7300_v44 = vpop.f32.mrf.mxu1  ;;  %6277 = vrot.lane.b32.xlu1 %v6163_v25, %s7562_s14  ;;  %v6165_v50 = vmul.f32 %v7486_v24, %v5882_v32  ;;  %v7490_v62 = vpop.eup %7489  ;;  %s7503_s14 = scalar_lea.vmem %s7502_s13, 1024 }
 0x35b   : > { %v7305_v35 = vpop.f32.mrf.mxu0  ;;  %p7505_p1 = scmp.lt.s32.totalorder %s7503_s14, %s7497_s19 }
 0x35d   : > { %v5955_v52 = vpop.f32.mrf.mxu1  ;;  %v6028_v1 = vpop.f32.mrf.mxu0  ;;  %p7506_p2 = por %p7505_p1, %p7504_p0 }
 0x35e   : > { %6281 = vrot.lane.b32.xlu1 %v6164_v58, %s7563_s20  ;;  %v6166_v37 = vmul.f32 %v7488_v60, %v5955_v52  ;;  %v6167_v27 = vmul.f32 %v7490_v62, %v6028_v1  ;;  %v7492_v38 = vpop.eup %7491 }
 0x35f   : > { %v7310_v19 = vpop.f32.mrf.mxu1  ;;  %v7315_v3 = vpop.f32.mrf.mxu0  ;;  %p7507_p3 = pnand %p7506_p2, %p7500_p13 }
 0x360   : > { %v7494_v42 = vpop.eup %7493 }
 0x361   : > { %v6101_v53 = vpop.f32.mrf.mxu1  ;;  %v6137_v15 = vmul.f32 %v7494_v42, %v8599_v6 }
 0x362   : > { %6285 = vrot.lane.b32.xlu1 %v6165_v50, %s7564_s22  ;;  %v6168_v18 = vmul.f32 %v7492_v38, %v6101_v53 }
 0x363   : > { %v7320_v34 = vpop.f32.mrf.mxu1 }
 0x366   : > { %6289 = vrot.lane.b32.xlu1 %v6166_v37, %s7565_s23 }
 0x36a   : > { %6293 = vrot.lane.b32.xlu1 %v6167_v27, %s7566_s27 }
 0x36e   : > { %6297 = vrot.lane.b32.xlu1 %v6168_v18, %s7567_s28 }
 0x37a   : > { %v6171_v7 = vpop.permute.xlu0 %6170 }
 0x37b   : > { %v6225_v46 = vsel %vm1047_vm2, %v6137_v15, %v6171_v7 }
 0x37e   : > { %v6175_v54 = vpop.permute.xlu0 %6174 }
 0x37f   : > { %v6226_v29 = vsel %vm243_vm0, %v6225_v46, %v6175_v54 }
 0x382   : > { %v6179_v36 = vpop.permute.xlu0 %6178 }
 0x383   : > { %v6228_v0 = vsel %vm6227_vm4, %v6226_v29, %v6179_v36 }
 0x386   : > { %v6183_v26 = vpop.permute.xlu0 %6182 }
 0x387   : > { %v6230_v39 = vsel %vm6229_vm5, %v6228_v0, %v6183_v26 }
 0x38a   : > { %v6187_v12 = vpop.permute.xlu0 %6186 }
 0x38b   : > { %v6232_v55 = vsel %vm6231_vm6, %v6230_v39, %v6187_v12 }
 0x38e   : > { %v6191_v51 = vpop.permute.xlu0 %6190 }
 0x38f   : > { %v6234_v6 = vsel %vm6233_vm7, %v6232_v55, %v6191_v51 }
 0x392   : > { %v6195_v28 = vpop.permute.xlu0 %6194 }
 0x393   : > { %v6236_v17 = vsel %vm6235_vm8, %v6234_v6, %v6195_v28 }
 0x394   : > { %6314 = vst [vmem:[%s8658_s5] sm:$0xff] %v6236_v17 }
 0x39a   : > { %v6199_v11 = vpop.permute.xlu1 %6198 }
 0x39b   : > { %v6237_v2 = vsel %vm1047_vm2, %v8627_v21, %v6199_v11  ;;  %v7496_v21 = vpop.eup %7495 }
 0x39c   : > { %v6153_v33 = vmul.f32 %v7496_v21, %v8622_v14 }
 0x39e   : > { %v6203_v57 = vpop.permute.xlu1 %6202 }
 0x39f   : > { %v6238_v41 = vsel %vm243_vm0, %v6237_v2, %v6203_v57 }
 0x3a2   : > { %v6207_v48 = vpop.permute.xlu1 %6206 }
 0x3a3   : > { %v6239_v22 = vsel %vm6227_vm4, %v6238_v41, %v6207_v48 }
 0x3a6   : > { %v6211_v8 = vpop.permute.xlu1 %6210 }
 0x3a7   : > { %v6240_v47 = vsel %vm6229_vm5, %v6239_v22, %v6211_v8 }
 0x3aa   : > { %v6215_v40 = vpop.permute.xlu1 %6214 }
 0x3ab   : > { %v6241_v20 = vsel %vm6231_vm6, %v6240_v47, %v6215_v40 }
 0x3ae   : > { %v6219_v31 = vpop.permute.xlu1 %6218 }
 0x3af   : > { %v6242_v45 = vsel %vm6233_vm7, %v6241_v20, %v6219_v31 }
 0x3b6   : > { %v6223_v23 = vpop.permute.xlu1 %6222 }
 0x3b7   : > { %v6243_v59 = vsel %vm6235_vm8, %v6242_v45, %v6223_v23  ;;  %v6250_v30 = vpop.permute.xlu0 %6249 }
 0x3b8   : > { %6315 = vst [vmem:[%s8658_s5 + $0x8] sm:$0xff] %v6243_v59 }
 0x3ba   : > { %v6246_v16 = vpop.permute.xlu1 %6245 }
 0x3bb   : > { %v6254_v9 = vpop.permute.xlu0 %6253  ;;  %v6300_v63 = vsel %vm1047_vm2, %v6153_v33, %v6246_v16 }
 0x3bc   : > { %v6301_v25 = vsel %vm243_vm0, %v6300_v63, %v6250_v30 }
 0x3bd   : > { %v6302_v32 = vsel %vm6227_vm4, %v6301_v25, %v6254_v9 }
 0x3bf   : > { %v6258_v49 = vpop.permute.xlu0 %6257 }
 0x3c0   : > { %v6303_v61 = vsel %vm6229_vm5, %v6302_v32, %v6258_v49 }
 0x3c3   : > { %v6262_v13 = vpop.permute.xlu0 %6261 }
 0x3c4   : > { %v6304_v43 = vsel %vm6231_vm6, %v6303_v61, %v6262_v13 }
 0x3c7   : > { %v6266_v5 = vpop.permute.xlu0 %6265 }
 0x3c8   : > { %v6274_v44 = vpop.permute.xlu1 %6273  ;;  %v6305_v35 = vsel %vm6233_vm7, %v6304_v43, %v6266_v5 }
 0x3c9   : > { %v6307_v3 = vsel %vm1047_vm2, %v8633_v4, %v6274_v44 }
 0x3cb   : > { %v6270_v58 = vpop.permute.xlu0 %6269 }
 0x3cc   : > { %v6306_v14 = vsel %vm6235_vm8, %v6305_v35, %v6270_v58  ;;  %v6278_v52 = vpop.permute.xlu1 %6277 }
 0x3cd   : > { %6316 = vst [vmem:[%s8658_s5 + $0x10] sm:$0xff] %v6306_v14  ;;  %v6308_v50 = vsel %vm243_vm0, %v6307_v3, %v6278_v52 }
 0x3d0   : > { %v6282_v1 = vpop.permute.xlu1 %6281 }
 0x3d1   : > { %v6309_v60 = vsel %vm6227_vm4, %v6308_v50, %v6282_v1 }
 0x3d4   : > { %v6286_v24 = vpop.permute.xlu1 %6285 }
 0x3d5   : > { %v6310_v34 = vsel %vm6229_vm5, %v6309_v60, %v6286_v24 }
 0x3d8   : > { %v6290_v19 = vpop.permute.xlu1 %6289 }
 0x3d9   : > { %v6311_v37 = vsel %vm6231_vm6, %v6310_v34, %v6290_v19 }
 0x3dc   : > { %v6294_v53 = vpop.permute.xlu1 %6293 }
 0x3dd   : > { %v6312_v62 = vsel %vm6233_vm7, %v6311_v37, %v6294_v53 }
 0x3e0   : > { %v6298_v27 = vpop.permute.xlu1 %6297 }
 0x3e1   : > { %v6313_v4 = vsel %vm6235_vm8, %v6312_v62, %v6298_v27 }
 0x3e2   : > { %6317 = vst [vmem:[%s8658_s5 + $0x18] sm:$0xff] %v6313_v4 }
 0x3e3   : > { %7510 = shalt.err (!%p7507_p3)
}
 0x3e4   : > { %s7511_s20 = scalar_lea.hbm %s8691_s10, 512  ;;  %s7515_s27 = scalar_lea.hbm %s8734_s4, 1024 }
 0x3e5   : > { %p7512_p4 = scmp.ne.s32.totalorder %s8691_s10, %s7511_s20  ;;  %p7516_p9 = scmp.lt.s32.totalorder %s8691_s10, %s8734_s4 }
 0x3e6   : > { %p7517_p10 = scmp.lt.s32.totalorder %s7515_s27, %s7511_s20 }
 0x3e7   : > { %p7513_p7 = pnand %p7512_p4, %p7632_p5 }
 0x3e8   : > { %p7518_p11 = por %p7517_p10, %p7516_p9 }
 0x3e9   : > { %p7514_p8 = pneg %p7513_p7 }
 0x3eb   : > { %p7519_p12 = pnand %p7518_p11, %p7514_p8 }
 0x3ed   : > { %7522 = shalt.err (!%p7519_p12)
}
 0x3ee   : > { %7321 = dma.vmem_to_hbm [thread:$0]  (%p7632_p5), %s6334_s7, 512, %s8691_s10, %s6319_s11  }
 0x3ef PF: > { %p7327_p13 = scmp.ge.s32.totalorder %s7557_s18, 2  ;;  %s6345_s30 = sand.u32 1, %s7545_s15  }
 0x3f0   : > { %s6346_s5 = scalar_lea.sflag [#allocation3], %s6345_s30 }
 0x3f1   : > { %p7324_p0 = pnand %p7327_p13, %p7636_p6 }
 0x3f3   : > { %p7325_p1 = pneg %p7324_p0 }
 0x3f5   : > { %7540 = dma.done.wait (%p7325_p1), %s6346_s5, 512  }
 0x3f6   : > { %7542 = vsyncadd (%p7325_p1), %s6346_s5, 4294966784  ;;  %p14_p2 = scmp.ge.s32.totalorder %s7619_s21, 4   ;;  %s8764_s15 = smov %s7549_s16 }
 0x3f7   : > { %s8765_s16 = smov %s7553_s17  ;;  %s8766_s17 = smov %s7630_s24 }
 0x3f8   : > { %s8767_s18 = smov %s7619_s21  ;;  %16 = sbr.rel (!%p14_p2) target bundleno = 3 (0x3), region = 71 }
 0x3fd   :  { %6351 = vsyncpa [#allocation3], 1 }
 0x3fe   :  { %6353 = vsyncpa [#allocation3 + $0x1], 1 }

</bundles_post_ra>
